<compile_context>
chip_gen: v5e
topology: v5e:2x2
jax: 0.10.0
libtpu: 0.0.40
codegen_flags: <defaults>
</compile_context>

<pallas_src>
import functools

import jax
import jax.numpy as jnp
from jax import lax
from jax.experimental import pallas as pl
from jax.experimental.pallas import tpu as pltpu

# ---- problem sizes (small, consistent with the module) -------------------------------------
B, N, DF = 2, 64, 32          # batch, tokens (8x8 spatial), feature_dim
S, DO = 8, 32                 # slots, object_dim
DK = DO                       # kvq_dim defaults to object_dim
ITERS = 3
EPS = 1e-8
CODEBOOK = 16                 # VQ pool size
HHID = 64                     # hypernet hidden width
G = 3 * DO                    # GRU gate width (r|z|n)

# packed-operand layout constants
WSLAB_W = 512                 # bf16 weight slab width (128-lane-aligned segments)
FSLAB_R = 24                  # f32 slab rows (4 bias rows + pad + 16 codebook rows)
OUT_W = 256                   # packed output slab width (lane-dense, 2 full vregs)
_COL_SEED = 0                 # [0, N)        seed attention
_COL_ATTN = N                 # [N, 2N)       final attention
_COL_SLOT = 2 * N             # [2N, 2N+DO)   final slots
_COL_IDX = 2 * N + DO         # pool index (as f32)
_COL_COMMIT = _COL_IDX + 1    # commit loss (replicated down the column)
_PAD_W = OUT_W - (_COL_COMMIT + 1)


# =============================================================================================
# Single fused kernel: seed slot-attention -> VQ pool -> hypernet -> final slot-attention
# =============================================================================================
def _fused_kernel(feat_ref, cond_ref, w_ref, f_ref, out_ref):
    feat = feat_ref[...]                                    # bf16 [N, DF]
    cond = cond_ref[...]                                    # f32  [S, DO]

    # ---- static slices of the packed operands (loaded once) --------------------------------
    w_feat = w_ref[:, 0:DO + G]                             # bf16 [DF, DO+G]  = [Wk_eff|Wv_ih]
    w_hh = w_ref[:, 128:128 + G]                            # bf16 [DO, G]
    w1 = w_ref[:, 256:256 + HHID]                           # bf16 [DO, HHID]
    w2t = w_ref[:, 384:384 + HHID]                          # bf16 [DO, HHID]  (= w2^T)

    b_ih = jnp.broadcast_to(f_ref[0:1, 0:G], (S, G))        # f32 [S, G] (hoisted broadcasts)
    b_hh = jnp.broadcast_to(f_ref[1:2, 0:G], (S, G))
    b1 = f_ref[2:3, 0:HHID]                                 # f32 [1, HHID]
    b2 = f_ref[3:4, 0:DO]                                   # f32 [1, DO]
    cb = f_ref[8:8 + CODEBOOK, 0:DO]                        # f32 [C, DO]

    # ---- shared prologue: Wq folded into K, Wv@W_ih folded into V, ONE projection ----------
    proj = jnp.dot(feat, w_feat, preferred_element_type=jnp.float32)   # [N, DO+G]
    k_eff = proj[:, :DO].astype(jnp.bfloat16)               # [N, DO]  (scale folded on host)
    v_ih = proj[:, DO:].astype(jnp.bfloat16)                # [N, G]

    def slot_attention(slots):
        # static unroll (use_implicit_differentiation=False -> fully unrolled iterations)
        for _ in range(ITERS):
            s_b = slots.astype(jnp.bfloat16)
            # logits directly in [S, N]: contract over DO, no materialized transpose
            logits = lax.dot_general(s_b, k_eff, (((1,), (1,)), ((), ())),
                                     preferred_element_type=jnp.float32)       # [S, N]
            # softmax over SLOTS == sublane axis (axis 0); exact divide -> rows sum to 1
            logits = logits - jnp.max(logits, axis=0, keepdims=True)
            e = jnp.exp(logits)
            attn = e / jnp.sum(e, axis=0, keepdims=True)                        # [S, N]
            # weighted mean over tokens (lane axis); internal normalizer via EUP recip
            w = attn * pl.reciprocal(jnp.sum(attn, axis=1, keepdims=True) + EPS,
                                     approx=True)
            # GRU with W_ih pre-folded into V: gi and gh are independent dots
            gi = jnp.dot(w.astype(jnp.bfloat16), v_ih,
                         preferred_element_type=jnp.float32) + b_ih             # [S, G]
            gh = jnp.dot(s_b, w_hh, preferred_element_type=jnp.float32) + b_hh  # [S, G]
            r = jax.nn.sigmoid(gi[:, :DO] + gh[:, :DO])
            z = jax.nn.sigmoid(gi[:, DO:2 * DO] + gh[:, DO:2 * DO])
            n = jnp.tanh(gi[:, 2 * DO:] + r * gh[:, 2 * DO:])   # PyTorch GRUCell semantics
            slots = (1.0 - z) * n + z * slots
        return slots, attn

    # ---- pass 1: seed slot attention (no top-down signal) ----------------------------------
    seed_slots, seed_attn = slot_attention(cond)

    # ---- VQ slot pool (kept fully f32 so the equality-argmin trick stays exact) ------------
    d = (jnp.sum(seed_slots * seed_slots, axis=-1, keepdims=True)
         - 2.0 * lax.dot_general(seed_slots, cb, (((1,), (1,)), ((), ())),
                                 preferred_element_type=jnp.float32)
         + jnp.sum(cb * cb, axis=-1)[None, :])                                   # [S, C]
    iota = lax.broadcasted_iota(jnp.int32, (S, CODEBOOK), 1)
    dmin = jnp.min(d, axis=-1, keepdims=True)
    idx2d = jnp.min(jnp.where(d == dmin, iota, CODEBOOK), axis=-1, keepdims=True)  # [S, 1]
    onehot = (iota == idx2d).astype(jnp.float32)                                   # [S, C]
    quant = jnp.dot(onehot, cb, preferred_element_type=jnp.float32)                # [S, DO]
    # TODO(synk): forward-only commit loss; no stop_gradient split / mean normalization.
    diff = seed_slots - quant
    commit11 = jnp.sum(jnp.sum(diff * diff, axis=1, keepdims=True), axis=0, keepdims=True)

    # ---- hypernet: 2-layer MLP on the quantized slots -> top-down signal --------------------
    h = jnp.maximum(jnp.dot(quant.astype(jnp.bfloat16), w1,
                            preferred_element_type=jnp.float32) + b1, 0.0)        # [S, HHID]
    td = lax.dot_general(h.astype(jnp.bfloat16), w2t, (((1,), (1,)), ((), ())),
                         preferred_element_type=jnp.float32) + b2                 # [S, DO]

    # ---- pass 2: final slot attention, top-down signal as additive bias on the init --------
    slots, attn = slot_attention(cond + td)

    # ---- single lane-dense packed output store (one writeback DMA, unmasked) ---------------
    idx_f = idx2d.astype(jnp.float32)                                             # [S, 1]
    commit_col = jnp.broadcast_to(commit11, (S, 1))                               # [S, 1]
    pad = jnp.zeros((S, _PAD_W), jnp.float32)
    out_ref[...] = jnp.concatenate([seed_attn, attn, slots, idx_f, commit_col, pad],
                                   axis=-1)                                       # [S, 256]


def _fused_forward(feature_bf16, conditioning, params):
    per_b = lambda d1, d2: pl.BlockSpec((None, d1, d2), lambda b: (b, 0, 0))

    def full(shape):
        # constant index_map -> weight blocks stay resident across the (tiny) batch grid
        return pl.BlockSpec(shape, lambda b: (0,) * len(shape))

    grid_spec = pltpu.PrefetchScalarGridSpec(
        num_scalar_prefetch=0,
        grid=(B,),
        in_specs=[
            per_b(N, DF),                # feature (bf16)
            per_b(S, DO),                # conditioning (f32)
            full((DF, WSLAB_W)),         # packed bf16 weight slab
            full((FSLAB_R, 128)),        # packed f32 bias + codebook slab
        ],
        out_specs=per_b(S, OUT_W),       # packed lane-dense output slab
    )
    return pl.pallas_call(
        _fused_kernel,
        out_shape=jax.ShapeDtypeStruct((B, S, OUT_W), jnp.float32),
        grid_spec=grid_spec,
        compiler_params=pltpu.CompilerParams(dimension_semantics=("parallel",)),
    )(feature_bf16, conditioning, params["wslab"], params["fslab"])


# =============================================================================================
# Full module forward (glue in plain JAX)
# =============================================================================================
def slot_attention_grouping_hyper_forward(feature, conditioning, params):
    # positional_embedding is None -> feature used directly.
    # td_downsample == 1 -> no Conv2d downsampler, td_feature == feature.
    slab = _fused_forward(feature.astype(jnp.bfloat16), conditioning, params)

    seed_attn = slab[:, :, _COL_SEED:_COL_SEED + N]
    attn = slab[:, :, _COL_ATTN:_COL_ATTN + N]
    slots = slab[:, :, _COL_SLOT:_COL_SLOT + DO]
    indices = slab[:, :, _COL_IDX].astype(jnp.int32)            # [B, S]
    commit_loss = jnp.sum(slab[:, 0, _COL_COMMIT])              # sum over batch

    # slot_mask is None -> empty-slot substitution skipped.
    return {
        "objects": slots,
        "feature_attributions": attn,
        "is_empty": None,
        "pool_indices": indices,
        "commit_loss": commit_loss,
        "pos_feat": feature,
        "pre_attn": seed_attn,
        "post_attn": attn,
    }


def _init_params(key):
    ks = jax.random.split(key, 8)

    def nrm(k, shape, fan_in):
        return jax.random.normal(k, shape, jnp.float32) / jnp.sqrt(float(fan_in))

    wq = nrm(ks[0], (DO, DK), DO)
    wk = nrm(ks[1], (DF, DK), DF)
    wv = nrm(ks[2], (DF, DK), DF)
    w_ih = nrm(ks[3], (DK, G), DK)
    w_hh = nrm(ks[4], (DO, G), DO)
    b_ih = jnp.zeros((G,), jnp.float32)
    b_hh = jnp.zeros((G,), jnp.float32)
    codebook = jax.random.normal(ks[5], (CODEBOOK, DO), jnp.float32)
    w1 = nrm(ks[6], (DO, HHID), DO)
    b1 = jnp.zeros((HHID,), jnp.float32)
    w2 = nrm(ks[7], (HHID, DO), HHID)
    b2 = jnp.zeros((DO,), jnp.float32)

    # host-side algebraic folds (associativity; accumulation in the kernel stays f32):
    #   logits = scale * (slots Wq)(feat Wk)^T = slots @ (feat @ [scale * Wk Wq^T])^T
    #   gi     = (w V) W_ih                   = w @ (feat @ [Wv W_ih])
    scale = float(DK) ** -0.5
    w_k_eff = scale * (wk @ wq.T)                               # [DF, DO]
    w_v_ih = wv @ w_ih                                          # [DF, G]
    w_feat = jnp.concatenate([w_k_eff, w_v_ih], axis=-1)        # [DF, DO+G] = [32, 128]

    # one bf16 weight slab, 128-lane-aligned segments (single input DMA, resident block)
    wslab = jnp.zeros((DF, WSLAB_W), jnp.float32)
    wslab = wslab.at[:, 0:DO + G].set(w_feat)
    wslab = wslab.at[:, 128:128 + G].set(w_hh)
    wslab = wslab.at[:, 256:256 + HHID].set(w1)
    wslab = wslab.at[:, 384:384 + HHID].set(w2.T)
    wslab = wslab.astype(jnp.bfloat16)

    # one f32 slab holding the GRU/hypernet biases and the VQ codebook
    fslab = jnp.zeros((FSLAB_R, 128), jnp.float32)
    fslab = fslab.at[0, 0:G].set(b_ih)
    fslab = fslab.at[1, 0:G].set(b_hh)
    fslab = fslab.at[2, 0:HHID].set(b1)
    fslab = fslab.at[3, 0:DO].set(b2)
    fslab = fslab.at[8:8 + CODEBOOK, 0:DO].set(codebook)

    return {"wslab": wslab, "fslab": fslab}


if __name__ == "__main__":
    key = jax.random.PRNGKey(0)
    k_feat, k_cond, k_par = jax.random.split(key, 3)

    feature = jax.random.normal(k_feat, (B, N, DF), jnp.float32)       # [B, tokens, feat_dim]
    conditioning = jax.random.normal(k_cond, (B, S, DO), jnp.float32) * (DO ** -0.5)
    params = _init_params(k_par)

    fwd = jax.jit(functools.partial(slot_attention_grouping_hyper_forward, params=params))
    out = fwd(feature, conditioning)
    jax.block_until_ready(out["objects"])
    jax.block_until_ready(out["commit_loss"])

    assert out["objects"].shape == (B, S, DO)
    assert out["feature_attributions"].shape == (B, S, N)
    assert out["pre_attn"].shape == (B, S, N)
    assert out["pool_indices"].shape == (B, S)
    assert bool(jnp.all(out["pool_indices"] >= 0)) and bool(jnp.all(out["pool_indices"] < CODEBOOK))
    assert bool(jnp.isfinite(out["commit_loss"]))
    print("KERNEL_OK")
</pallas_src>

<mosaic_0001>
module attributes {stable_mosaic.version = 11 : i64} {
  func.func @_fused_kernel(%arg0: i32, %arg1: memref<1x64x32xbf16, #tpu.memory_space<vmem>>, %arg2: memref<1x8x32xf32, #tpu.memory_space<vmem>>, %arg3: memref<32x512xbf16, #tpu.memory_space<vmem>>, %arg4: memref<24x128xf32, #tpu.memory_space<vmem>>, %arg5: memref<1x8x256xf32, #tpu.memory_space<vmem>>) attributes {dimension_semantics = [#tpu.dimension_semantics<parallel>], iteration_bounds = array<i64: 2>, scalar_prefetch = 0 : i64, scratch_operands = 0 : i64, tpu.core_type = #tpu.core_type<tc>, window_params = [{transform_indices = @transform_0, window_bounds = array<i64: 1, 64, 32>}, {transform_indices = @transform_1, window_bounds = array<i64: 1, 8, 32>}, {pipeline_mode = #tpu.pipeline_mode<synchronous>, transform_indices = @transform_2, window_bounds = array<i64: 32, 512>}, {pipeline_mode = #tpu.pipeline_mode<synchronous>, transform_indices = @transform_3, window_bounds = array<i64: 24, 128>}, {transform_indices = @transform_4, window_bounds = array<i64: 1, 8, 256>}]} {
    %c0 = arith.constant 0 : index
    %c0_0 = arith.constant 0 : index
    %c0_1 = arith.constant 0 : index
    %0 = vector.load %arg1[%c0, %c0_0, %c0_1] : memref<1x64x32xbf16, #tpu.memory_space<vmem>>, vector<1x64x32xbf16>
    %1 = vector.shape_cast %0 : vector<1x64x32xbf16> to vector<64x32xbf16>
    %c0_2 = arith.constant 0 : index
    %c0_3 = arith.constant 0 : index
    %c0_4 = arith.constant 0 : index
    %2 = vector.load %arg2[%c0_2, %c0_3, %c0_4] : memref<1x8x32xf32, #tpu.memory_space<vmem>>, vector<1x8x32xf32>
    %3 = vector.shape_cast %2 : vector<1x8x32xf32> to vector<8x32xf32>
    %c0_5 = arith.constant 0 : index
    %c0_6 = arith.constant 0 : index
    %4 = vector.load %arg3[%c0_5, %c0_6] : memref<32x512xbf16, #tpu.memory_space<vmem>>, vector<32x128xbf16>
    %c0_7 = arith.constant 0 : index
    %c128 = arith.constant 128 : index
    %5 = vector.load %arg3[%c0_7, %c128] : memref<32x512xbf16, #tpu.memory_space<vmem>>, vector<32x96xbf16>
    %c0_8 = arith.constant 0 : index
    %c256 = arith.constant 256 : index
    %6 = vector.load %arg3[%c0_8, %c256] : memref<32x512xbf16, #tpu.memory_space<vmem>>, vector<32x64xbf16>
    %c0_9 = arith.constant 0 : index
    %c384 = arith.constant 384 : index
    %7 = vector.load %arg3[%c0_9, %c384] : memref<32x512xbf16, #tpu.memory_space<vmem>>, vector<32x64xbf16>
    %c0_10 = arith.constant 0 : index
    %c0_11 = arith.constant 0 : index
    %8 = vector.load %arg4[%c0_10, %c0_11] : memref<24x128xf32, #tpu.memory_space<vmem>>, vector<1x96xf32>
    %9 = vector.shape_cast %8 : vector<1x96xf32> to vector<1x96xf32>
    %10 = vector.broadcast %9 : vector<1x96xf32> to vector<8x96xf32>
    %c1 = arith.constant 1 : index
    %c0_12 = arith.constant 0 : index
    %11 = vector.load %arg4[%c1, %c0_12] : memref<24x128xf32, #tpu.memory_space<vmem>>, vector<1x96xf32>
    %12 = vector.shape_cast %11 : vector<1x96xf32> to vector<1x96xf32>
    %13 = vector.broadcast %12 : vector<1x96xf32> to vector<8x96xf32>
    %c2 = arith.constant 2 : index
    %c0_13 = arith.constant 0 : index
    %14 = vector.load %arg4[%c2, %c0_13] : memref<24x128xf32, #tpu.memory_space<vmem>>, vector<1x64xf32>
    %c3 = arith.constant 3 : index
    %c0_14 = arith.constant 0 : index
    %15 = vector.load %arg4[%c3, %c0_14] : memref<24x128xf32, #tpu.memory_space<vmem>>, vector<1x32xf32>
    %c8 = arith.constant 8 : index
    %c0_15 = arith.constant 0 : index
    %16 = vector.load %arg4[%c8, %c0_15] : memref<24x128xf32, #tpu.memory_space<vmem>>, vector<16x32xf32>
    %cst = arith.constant dense<0.000000e+00> : vector<64x128xf32>
    %17 = tpu.matmul %1, %4, %cst {dimension_numbers = #tpu.dot_dimension_numbers<[1], [0], [0], [1], [0, 0, 1, 1], [], []>} : vector<64x32xbf16>, vector<32x128xbf16>, vector<64x128xf32> -> vector<64x128xf32>
    %18 = vector.extract_strided_slice %17 {offsets = [0, 0], sizes = [64, 32], strides = [1, 1]} : vector<64x128xf32> to vector<64x32xf32>
    %19 = arith.truncf %18 : vector<64x32xf32> to vector<64x32xbf16>
    %20 = vector.extract_strided_slice %17 {offsets = [0, 32], sizes = [64, 96], strides = [1, 1]} : vector<64x128xf32> to vector<64x96xf32>
    %21 = arith.truncf %20 : vector<64x96xf32> to vector<64x96xbf16>
    %22 = arith.truncf %3 : vector<8x32xf32> to vector<8x32xbf16>
    %cst_16 = arith.constant dense<0.000000e+00> : vector<8x64xf32>
    %23 = tpu.matmul %22, %19, %cst_16 {dimension_numbers = #tpu.dot_dimension_numbers<[1], [1], [0], [0], [0, 0, 1, 0], [], []>} : vector<8x32xbf16>, vector<64x32xbf16>, vector<8x64xf32> -> vector<8x64xf32>
    %cst_17 = arith.constant dense<0xFF800000> : vector<64xf32>
    %24 = vector.multi_reduction <maximumf>, %23, %cst_17 [0] : vector<8x64xf32> to vector<64xf32>
    %25 = vector.shape_cast %24 : vector<64xf32> to vector<1x64xf32>
    %26 = vector.broadcast %25 : vector<1x64xf32> to vector<8x64xf32>
    %27 = arith.subf %23, %26 : vector<8x64xf32>
    %28 = math.exp %27 : vector<8x64xf32>
    %cst_18 = arith.constant dense<0.000000e+00> : vector<64xf32>
    %29 = vector.multi_reduction <add>, %28, %cst_18 [0] : vector<8x64xf32> to vector<64xf32>
    %30 = vector.shape_cast %29 : vector<64xf32> to vector<1x64xf32>
    %31 = vector.broadcast %30 : vector<1x64xf32> to vector<8x64xf32>
    %32 = arith.divf %28, %31 : vector<8x64xf32>
    %cst_19 = arith.constant dense<0.000000e+00> : vector<8xf32>
    %33 = vector.multi_reduction <add>, %32, %cst_19 [1] : vector<8x64xf32> to vector<8xf32>
    %34 = vector.shape_cast %33 : vector<8xf32> to vector<8x1xf32>
    %cst_20 = arith.constant 9.99999993E-9 : f32
    %35 = vector.broadcast %cst_20 : f32 to vector<8x1xf32>
    %36 = arith.addf %34, %35 : vector<8x1xf32>
    %37 = tpu.reciprocal %36 {approx = true} : vector<8x1xf32> -> vector<8x1xf32>
    %38 = vector.broadcast %37 : vector<8x1xf32> to vector<8x64xf32>
    %39 = arith.mulf %32, %38 : vector<8x64xf32>
    %40 = arith.truncf %39 : vector<8x64xf32> to vector<8x64xbf16>
    %cst_21 = arith.constant dense<0.000000e+00> : vector<8x96xf32>
    %41 = tpu.matmul %40, %21, %cst_21 {dimension_numbers = #tpu.dot_dimension_numbers<[1], [0], [0], [1], [0, 0, 1, 1], [], []>} : vector<8x64xbf16>, vector<64x96xbf16>, vector<8x96xf32> -> vector<8x96xf32>
    %42 = arith.addf %41, %10 : vector<8x96xf32>
    %cst_22 = arith.constant dense<0.000000e+00> : vector<8x96xf32>
    %43 = tpu.matmul %22, %5, %cst_22 {dimension_numbers = #tpu.dot_dimension_numbers<[1], [0], [0], [1], [0, 0, 1, 1], [], []>} : vector<8x32xbf16>, vector<32x96xbf16>, vector<8x96xf32> -> vector<8x96xf32>
    %44 = arith.addf %43, %13 : vector<8x96xf32>
    %45 = vector.extract_strided_slice %42 {offsets = [0, 0], sizes = [8, 32], strides = [1, 1]} : vector<8x96xf32> to vector<8x32xf32>
    %46 = vector.extract_strided_slice %44 {offsets = [0, 0], sizes = [8, 32], strides = [1, 1]} : vector<8x96xf32> to vector<8x32xf32>
    %47 = arith.addf %45, %46 : vector<8x32xf32>
    %48 = arith.negf %47 : vector<8x32xf32>
    %49 = math.exp %48 : vector<8x32xf32>
    %cst_23 = arith.constant 1.000000e+00 : f32
    %50 = vector.broadcast %cst_23 : f32 to vector<8x32xf32>
    %51 = arith.addf %50, %49 : vector<8x32xf32>
    %52 = arith.divf %50, %51 : vector<8x32xf32>
    %53 = vector.extract_strided_slice %42 {offsets = [0, 32], sizes = [8, 32], strides = [1, 1]} : vector<8x96xf32> to vector<8x32xf32>
    %54 = vector.extract_strided_slice %44 {offsets = [0, 32], sizes = [8, 32], strides = [1, 1]} : vector<8x96xf32> to vector<8x32xf32>
    %55 = arith.addf %53, %54 : vector<8x32xf32>
    %56 = arith.negf %55 : vector<8x32xf32>
    %57 = math.exp %56 : vector<8x32xf32>
    %cst_24 = arith.constant 1.000000e+00 : f32
    %58 = vector.broadcast %cst_24 : f32 to vector<8x32xf32>
    %59 = arith.addf %58, %57 : vector<8x32xf32>
    %60 = arith.divf %58, %59 : vector<8x32xf32>
    %61 = vector.extract_strided_slice %42 {offsets = [0, 64], sizes = [8, 32], strides = [1, 1]} : vector<8x96xf32> to vector<8x32xf32>
    %62 = vector.extract_strided_slice %44 {offsets = [0, 64], sizes = [8, 32], strides = [1, 1]} : vector<8x96xf32> to vector<8x32xf32>
    %63 = arith.mulf %52, %62 : vector<8x32xf32>
    %64 = arith.addf %61, %63 : vector<8x32xf32>
    %65 = math.tanh %64 : vector<8x32xf32>
    %cst_25 = arith.constant 1.000000e+00 : f32
    %66 = vector.broadcast %cst_25 : f32 to vector<8x32xf32>
    %67 = arith.subf %66, %60 : vector<8x32xf32>
    %68 = arith.mulf %67, %65 : vector<8x32xf32>
    %69 = arith.mulf %60, %3 : vector<8x32xf32>
    %70 = arith.addf %68, %69 : vector<8x32xf32>
    %71 = arith.truncf %70 : vector<8x32xf32> to vector<8x32xbf16>
    %cst_26 = arith.constant dense<0.000000e+00> : vector<8x64xf32>
    %72 = tpu.matmul %71, %19, %cst_26 {dimension_numbers = #tpu.dot_dimension_numbers<[1], [1], [0], [0], [0, 0, 1, 0], [], []>} : vector<8x32xbf16>, vector<64x32xbf16>, vector<8x64xf32> -> vector<8x64xf32>
    %cst_27 = arith.constant dense<0xFF800000> : vector<64xf32>
    %73 = vector.multi_reduction <maximumf>, %72, %cst_27 [0] : vector<8x64xf32> to vector<64xf32>
    %74 = vector.shape_cast %73 : vector<64xf32> to vector<1x64xf32>
    %75 = vector.broadcast %74 : vector<1x64xf32> to vector<8x64xf32>
    %76 = arith.subf %72, %75 : vector<8x64xf32>
    %77 = math.exp %76 : vector<8x64xf32>
    %cst_28 = arith.constant dense<0.000000e+00> : vector<64xf32>
    %78 = vector.multi_reduction <add>, %77, %cst_28 [0] : vector<8x64xf32> to vector<64xf32>
    %79 = vector.shape_cast %78 : vector<64xf32> to vector<1x64xf32>
    %80 = vector.broadcast %79 : vector<1x64xf32> to vector<8x64xf32>
    %81 = arith.divf %77, %80 : vector<8x64xf32>
    %cst_29 = arith.constant dense<0.000000e+00> : vector<8xf32>
    %82 = vector.multi_reduction <add>, %81, %cst_29 [1] : vector<8x64xf32> to vector<8xf32>
    %83 = vector.shape_cast %82 : vector<8xf32> to vector<8x1xf32>
    %cst_30 = arith.constant 9.99999993E-9 : f32
    %84 = vector.broadcast %cst_30 : f32 to vector<8x1xf32>
    %85 = arith.addf %83, %84 : vector<8x1xf32>
    %86 = tpu.reciprocal %85 {approx = true} : vector<8x1xf32> -> vector<8x1xf32>
    %87 = vector.broadcast %86 : vector<8x1xf32> to vector<8x64xf32>
    %88 = arith.mulf %81, %87 : vector<8x64xf32>
    %89 = arith.truncf %88 : vector<8x64xf32> to vector<8x64xbf16>
    %cst_31 = arith.constant dense<0.000000e+00> : vector<8x96xf32>
    %90 = tpu.matmul %89, %21, %cst_31 {dimension_numbers = #tpu.dot_dimension_numbers<[1], [0], [0], [1], [0, 0, 1, 1], [], []>} : vector<8x64xbf16>, vector<64x96xbf16>, vector<8x96xf32> -> vector<8x96xf32>
    %91 = arith.addf %90, %10 : vector<8x96xf32>
    %cst_32 = arith.constant dense<0.000000e+00> : vector<8x96xf32>
    %92 = tpu.matmul %71, %5, %cst_32 {dimension_numbers = #tpu.dot_dimension_numbers<[1], [0], [0], [1], [0, 0, 1, 1], [], []>} : vector<8x32xbf16>, vector<32x96xbf16>, vector<8x96xf32> -> vector<8x96xf32>
    %93 = arith.addf %92, %13 : vector<8x96xf32>
    %94 = vector.extract_strided_slice %91 {offsets = [0, 0], sizes = [8, 32], strides = [1, 1]} : vector<8x96xf32> to vector<8x32xf32>
    %95 = vector.extract_strided_slice %93 {offsets = [0, 0], sizes = [8, 32], strides = [1, 1]} : vector<8x96xf32> to vector<8x32xf32>
    %96 = arith.addf %94, %95 : vector<8x32xf32>
    %97 = arith.negf %96 : vector<8x32xf32>
    %98 = math.exp %97 : vector<8x32xf32>
    %cst_33 = arith.constant 1.000000e+00 : f32
    %99 = vector.broadcast %cst_33 : f32 to vector<8x32xf32>
    %100 = arith.addf %99, %98 : vector<8x32xf32>
    %101 = arith.divf %99, %100 : vector<8x32xf32>
    %102 = vector.extract_strided_slice %91 {offsets = [0, 32], sizes = [8, 32], strides = [1, 1]} : vector<8x96xf32> to vector<8x32xf32>
    %103 = vector.extract_strided_slice %93 {offsets = [0, 32], sizes = [8, 32], strides = [1, 1]} : vector<8x96xf32> to vector<8x32xf32>
    %104 = arith.addf %102, %103 : vector<8x32xf32>
    %105 = arith.negf %104 : vector<8x32xf32>
    %106 = math.exp %105 : vector<8x32xf32>
    %cst_34 = arith.constant 1.000000e+00 : f32
    %107 = vector.broadcast %cst_34 : f32 to vector<8x32xf32>
    %108 = arith.addf %107, %106 : vector<8x32xf32>
    %109 = arith.divf %107, %108 : vector<8x32xf32>
    %110 = vector.extract_strided_slice %91 {offsets = [0, 64], sizes = [8, 32], strides = [1, 1]} : vector<8x96xf32> to vector<8x32xf32>
    %111 = vector.extract_strided_slice %93 {offsets = [0, 64], sizes = [8, 32], strides = [1, 1]} : vector<8x96xf32> to vector<8x32xf32>
    %112 = arith.mulf %101, %111 : vector<8x32xf32>
    %113 = arith.addf %110, %112 : vector<8x32xf32>
    %114 = math.tanh %113 : vector<8x32xf32>
    %cst_35 = arith.constant 1.000000e+00 : f32
    %115 = vector.broadcast %cst_35 : f32 to vector<8x32xf32>
    %116 = arith.subf %115, %109 : vector<8x32xf32>
    %117 = arith.mulf %116, %114 : vector<8x32xf32>
    %118 = arith.mulf %109, %70 : vector<8x32xf32>
    %119 = arith.addf %117, %118 : vector<8x32xf32>
    %120 = arith.truncf %119 : vector<8x32xf32> to vector<8x32xbf16>
    %cst_36 = arith.constant dense<0.000000e+00> : vector<8x64xf32>
    %121 = tpu.matmul %120, %19, %cst_36 {dimension_numbers = #tpu.dot_dimension_numbers<[1], [1], [0], [0], [0, 0, 1, 0], [], []>} : vector<8x32xbf16>, vector<64x32xbf16>, vector<8x64xf32> -> vector<8x64xf32>
    %cst_37 = arith.constant dense<0xFF800000> : vector<64xf32>
    %122 = vector.multi_reduction <maximumf>, %121, %cst_37 [0] : vector<8x64xf32> to vector<64xf32>
    %123 = vector.shape_cast %122 : vector<64xf32> to vector<1x64xf32>
    %124 = vector.broadcast %123 : vector<1x64xf32> to vector<8x64xf32>
    %125 = arith.subf %121, %124 : vector<8x64xf32>
    %126 = math.exp %125 : vector<8x64xf32>
    %cst_38 = arith.constant dense<0.000000e+00> : vector<64xf32>
    %127 = vector.multi_reduction <add>, %126, %cst_38 [0] : vector<8x64xf32> to vector<64xf32>
    %128 = vector.shape_cast %127 : vector<64xf32> to vector<1x64xf32>
    %129 = vector.broadcast %128 : vector<1x64xf32> to vector<8x64xf32>
    %130 = arith.divf %126, %129 : vector<8x64xf32>
    %cst_39 = arith.constant dense<0.000000e+00> : vector<8xf32>
    %131 = vector.multi_reduction <add>, %130, %cst_39 [1] : vector<8x64xf32> to vector<8xf32>
    %132 = vector.shape_cast %131 : vector<8xf32> to vector<8x1xf32>
    %cst_40 = arith.constant 9.99999993E-9 : f32
    %133 = vector.broadcast %cst_40 : f32 to vector<8x1xf32>
    %134 = arith.addf %132, %133 : vector<8x1xf32>
    %135 = tpu.reciprocal %134 {approx = true} : vector<8x1xf32> -> vector<8x1xf32>
    %136 = vector.broadcast %135 : vector<8x1xf32> to vector<8x64xf32>
    %137 = arith.mulf %130, %136 : vector<8x64xf32>
    %138 = arith.truncf %137 : vector<8x64xf32> to vector<8x64xbf16>
    %cst_41 = arith.constant dense<0.000000e+00> : vector<8x96xf32>
    %139 = tpu.matmul %138, %21, %cst_41 {dimension_numbers = #tpu.dot_dimension_numbers<[1], [0], [0], [1], [0, 0, 1, 1], [], []>} : vector<8x64xbf16>, vector<64x96xbf16>, vector<8x96xf32> -> vector<8x96xf32>
    %140 = arith.addf %139, %10 : vector<8x96xf32>
    %cst_42 = arith.constant dense<0.000000e+00> : vector<8x96xf32>
    %141 = tpu.matmul %120, %5, %cst_42 {dimension_numbers = #tpu.dot_dimension_numbers<[1], [0], [0], [1], [0, 0, 1, 1], [], []>} : vector<8x32xbf16>, vector<32x96xbf16>, vector<8x96xf32> -> vector<8x96xf32>
    %142 = arith.addf %141, %13 : vector<8x96xf32>
    %143 = vector.extract_strided_slice %140 {offsets = [0, 0], sizes = [8, 32], strides = [1, 1]} : vector<8x96xf32> to vector<8x32xf32>
    %144 = vector.extract_strided_slice %142 {offsets = [0, 0], sizes = [8, 32], strides = [1, 1]} : vector<8x96xf32> to vector<8x32xf32>
    %145 = arith.addf %143, %144 : vector<8x32xf32>
    %146 = arith.negf %145 : vector<8x32xf32>
    %147 = math.exp %146 : vector<8x32xf32>
    %cst_43 = arith.constant 1.000000e+00 : f32
    %148 = vector.broadcast %cst_43 : f32 to vector<8x32xf32>
    %149 = arith.addf %148, %147 : vector<8x32xf32>
    %150 = arith.divf %148, %149 : vector<8x32xf32>
    %151 = vector.extract_strided_slice %140 {offsets = [0, 32], sizes = [8, 32], strides = [1, 1]} : vector<8x96xf32> to vector<8x32xf32>
    %152 = vector.extract_strided_slice %142 {offsets = [0, 32], sizes = [8, 32], strides = [1, 1]} : vector<8x96xf32> to vector<8x32xf32>
    %153 = arith.addf %151, %152 : vector<8x32xf32>
    %154 = arith.negf %153 : vector<8x32xf32>
    %155 = math.exp %154 : vector<8x32xf32>
    %cst_44 = arith.constant 1.000000e+00 : f32
    %156 = vector.broadcast %cst_44 : f32 to vector<8x32xf32>
    %157 = arith.addf %156, %155 : vector<8x32xf32>
    %158 = arith.divf %156, %157 : vector<8x32xf32>
    %159 = vector.extract_strided_slice %140 {offsets = [0, 64], sizes = [8, 32], strides = [1, 1]} : vector<8x96xf32> to vector<8x32xf32>
    %160 = vector.extract_strided_slice %142 {offsets = [0, 64], sizes = [8, 32], strides = [1, 1]} : vector<8x96xf32> to vector<8x32xf32>
    %161 = arith.mulf %150, %160 : vector<8x32xf32>
    %162 = arith.addf %159, %161 : vector<8x32xf32>
    %163 = math.tanh %162 : vector<8x32xf32>
    %cst_45 = arith.constant 1.000000e+00 : f32
    %164 = vector.broadcast %cst_45 : f32 to vector<8x32xf32>
    %165 = arith.subf %164, %158 : vector<8x32xf32>
    %166 = arith.mulf %165, %163 : vector<8x32xf32>
    %167 = arith.mulf %158, %119 : vector<8x32xf32>
    %168 = arith.addf %166, %167 : vector<8x32xf32>
    %169 = arith.mulf %168, %168 : vector<8x32xf32>
    %cst_46 = arith.constant dense<0.000000e+00> : vector<8xf32>
    %170 = vector.multi_reduction <add>, %169, %cst_46 [1] : vector<8x32xf32> to vector<8xf32>
    %171 = vector.shape_cast %170 : vector<8xf32> to vector<8x1xf32>
    %cst_47 = arith.constant dense<0.000000e+00> : vector<8x16xf32>
    %172 = tpu.matmul %168, %16, %cst_47 {dimension_numbers = #tpu.dot_dimension_numbers<[1], [1], [0], [0], [0, 0, 1, 0], [], []>} : vector<8x32xf32>, vector<16x32xf32>, vector<8x16xf32> -> vector<8x16xf32>
    %cst_48 = arith.constant 2.000000e+00 : f32
    %173 = vector.broadcast %cst_48 : f32 to vector<8x16xf32>
    %174 = arith.mulf %173, %172 : vector<8x16xf32>
    %175 = vector.broadcast %171 : vector<8x1xf32> to vector<8x16xf32>
    %176 = arith.subf %175, %174 : vector<8x16xf32>
    %177 = arith.mulf %16, %16 : vector<16x32xf32>
    %cst_49 = arith.constant dense<0.000000e+00> : vector<16xf32>
    %178 = vector.multi_reduction <add>, %177, %cst_49 [1] : vector<16x32xf32> to vector<16xf32>
    %179 = vector.shape_cast %178 : vector<16xf32> to vector<1x16xf32>
    %180 = vector.broadcast %179 : vector<1x16xf32> to vector<8x16xf32>
    %181 = arith.addf %176, %180 : vector<8x16xf32>
    %182 = tpu.iota {dimensions = array<i32: 1>} : vector<8x16xi32>
    %cst_50 = arith.constant dense<0x7F800000> : vector<8xf32>
    %183 = vector.multi_reduction <minimumf>, %181, %cst_50 [1] : vector<8x16xf32> to vector<8xf32>
    %184 = vector.shape_cast %183 : vector<8xf32> to vector<8x1xf32>
    %185 = vector.broadcast %184 : vector<8x1xf32> to vector<8x16xf32>
    %186 = arith.cmpf oeq, %181, %185 : vector<8x16xf32>
    %c16_i32 = arith.constant 16 : i32
    %187 = vector.broadcast %c16_i32 : i32 to vector<8x16xi32>
    %188 = arith.select %186, %182, %187 : vector<8x16xi1>, vector<8x16xi32>
    %cst_51 = arith.constant dense<2147483647> : vector<8xi32>
    %189 = vector.multi_reduction <minsi>, %188, %cst_51 [1] : vector<8x16xi32> to vector<8xi32>
    %190 = vector.shape_cast %189 : vector<8xi32> to vector<8x1xi32>
    %191 = vector.broadcast %190 : vector<8x1xi32> to vector<8x16xi32>
    %192 = arith.cmpi eq, %182, %191 : vector<8x16xi32>
    %193 = arith.extui %192 : vector<8x16xi1> to vector<8x16xi32>
    %194 = arith.sitofp %193 : vector<8x16xi32> to vector<8x16xf32>
    %cst_52 = arith.constant dense<0.000000e+00> : vector<8x32xf32>
    %195 = tpu.matmul %194, %16, %cst_52 {dimension_numbers = #tpu.dot_dimension_numbers<[1], [0], [0], [1], [0, 0, 1, 1], [], []>} : vector<8x16xf32>, vector<16x32xf32>, vector<8x32xf32> -> vector<8x32xf32>
    %196 = arith.subf %168, %195 : vector<8x32xf32>
    %197 = arith.mulf %196, %196 : vector<8x32xf32>
    %cst_53 = arith.constant dense<0.000000e+00> : vector<8xf32>
    %198 = vector.multi_reduction <add>, %197, %cst_53 [1] : vector<8x32xf32> to vector<8xf32>
    %199 = vector.shape_cast %198 : vector<8xf32> to vector<8x1xf32>
    %cst_54 = arith.constant dense<0.000000e+00> : vector<1xf32>
    %200 = vector.multi_reduction <add>, %199, %cst_54 [0] : vector<8x1xf32> to vector<1xf32>
    %201 = vector.shape_cast %200 : vector<1xf32> to vector<1x1xf32>
    %202 = arith.truncf %195 : vector<8x32xf32> to vector<8x32xbf16>
    %cst_55 = arith.constant dense<0.000000e+00> : vector<8x64xf32>
    %203 = tpu.matmul %202, %6, %cst_55 {dimension_numbers = #tpu.dot_dimension_numbers<[1], [0], [0], [1], [0, 0, 1, 1], [], []>} : vector<8x32xbf16>, vector<32x64xbf16>, vector<8x64xf32> -> vector<8x64xf32>
    %204 = vector.broadcast %14 : vector<1x64xf32> to vector<8x64xf32>
    %205 = arith.addf %203, %204 : vector<8x64xf32>
    %cst_56 = arith.constant 0.000000e+00 : f32
    %206 = vector.broadcast %cst_56 : f32 to vector<8x64xf32>
    %207 = arith.maximumf %205, %206 : vector<8x64xf32>
    %208 = arith.truncf %207 : vector<8x64xf32> to vector<8x64xbf16>
    %cst_57 = arith.constant dense<0.000000e+00> : vector<8x32xf32>
    %209 = tpu.matmul %208, %7, %cst_57 {dimension_numbers = #tpu.dot_dimension_numbers<[1], [1], [0], [0], [0, 0, 1, 0], [], []>} : vector<8x64xbf16>, vector<32x64xbf16>, vector<8x32xf32> -> vector<8x32xf32>
    %210 = vector.broadcast %15 : vector<1x32xf32> to vector<8x32xf32>
    %211 = arith.addf %209, %210 : vector<8x32xf32>
    %212 = arith.addf %3, %211 : vector<8x32xf32>
    %213 = arith.truncf %212 : vector<8x32xf32> to vector<8x32xbf16>
    %cst_58 = arith.constant dense<0.000000e+00> : vector<8x64xf32>
    %214 = tpu.matmul %213, %19, %cst_58 {dimension_numbers = #tpu.dot_dimension_numbers<[1], [1], [0], [0], [0, 0, 1, 0], [], []>} : vector<8x32xbf16>, vector<64x32xbf16>, vector<8x64xf32> -> vector<8x64xf32>
    %cst_59 = arith.constant dense<0xFF800000> : vector<64xf32>
    %215 = vector.multi_reduction <maximumf>, %214, %cst_59 [0] : vector<8x64xf32> to vector<64xf32>
    %216 = vector.shape_cast %215 : vector<64xf32> to vector<1x64xf32>
    %217 = vector.broadcast %216 : vector<1x64xf32> to vector<8x64xf32>
    %218 = arith.subf %214, %217 : vector<8x64xf32>
    %219 = math.exp %218 : vector<8x64xf32>
    %cst_60 = arith.constant dense<0.000000e+00> : vector<64xf32>
    %220 = vector.multi_reduction <add>, %219, %cst_60 [0] : vector<8x64xf32> to vector<64xf32>
    %221 = vector.shape_cast %220 : vector<64xf32> to vector<1x64xf32>
    %222 = vector.broadcast %221 : vector<1x64xf32> to vector<8x64xf32>
    %223 = arith.divf %219, %222 : vector<8x64xf32>
    %cst_61 = arith.constant dense<0.000000e+00> : vector<8xf32>
    %224 = vector.multi_reduction <add>, %223, %cst_61 [1] : vector<8x64xf32> to vector<8xf32>
    %225 = vector.shape_cast %224 : vector<8xf32> to vector<8x1xf32>
    %cst_62 = arith.constant 9.99999993E-9 : f32
    %226 = vector.broadcast %cst_62 : f32 to vector<8x1xf32>
    %227 = arith.addf %225, %226 : vector<8x1xf32>
    %228 = tpu.reciprocal %227 {approx = true} : vector<8x1xf32> -> vector<8x1xf32>
    %229 = vector.broadcast %228 : vector<8x1xf32> to vector<8x64xf32>
    %230 = arith.mulf %223, %229 : vector<8x64xf32>
    %231 = arith.truncf %230 : vector<8x64xf32> to vector<8x64xbf16>
    %cst_63 = arith.constant dense<0.000000e+00> : vector<8x96xf32>
    %232 = tpu.matmul %231, %21, %cst_63 {dimension_numbers = #tpu.dot_dimension_numbers<[1], [0], [0], [1], [0, 0, 1, 1], [], []>} : vector<8x64xbf16>, vector<64x96xbf16>, vector<8x96xf32> -> vector<8x96xf32>
    %233 = arith.addf %232, %10 : vector<8x96xf32>
    %cst_64 = arith.constant dense<0.000000e+00> : vector<8x96xf32>
    %234 = tpu.matmul %213, %5, %cst_64 {dimension_numbers = #tpu.dot_dimension_numbers<[1], [0], [0], [1], [0, 0, 1, 1], [], []>} : vector<8x32xbf16>, vector<32x96xbf16>, vector<8x96xf32> -> vector<8x96xf32>
    %235 = arith.addf %234, %13 : vector<8x96xf32>
    %236 = vector.extract_strided_slice %233 {offsets = [0, 0], sizes = [8, 32], strides = [1, 1]} : vector<8x96xf32> to vector<8x32xf32>
    %237 = vector.extract_strided_slice %235 {offsets = [0, 0], sizes = [8, 32], strides = [1, 1]} : vector<8x96xf32> to vector<8x32xf32>
    %238 = arith.addf %236, %237 : vector<8x32xf32>
    %239 = arith.negf %238 : vector<8x32xf32>
    %240 = math.exp %239 : vector<8x32xf32>
    %cst_65 = arith.constant 1.000000e+00 : f32
    %241 = vector.broadcast %cst_65 : f32 to vector<8x32xf32>
    %242 = arith.addf %241, %240 : vector<8x32xf32>
    %243 = arith.divf %241, %242 : vector<8x32xf32>
    %244 = vector.extract_strided_slice %233 {offsets = [0, 32], sizes = [8, 32], strides = [1, 1]} : vector<8x96xf32> to vector<8x32xf32>
    %245 = vector.extract_strided_slice %235 {offsets = [0, 32], sizes = [8, 32], strides = [1, 1]} : vector<8x96xf32> to vector<8x32xf32>
    %246 = arith.addf %244, %245 : vector<8x32xf32>
    %247 = arith.negf %246 : vector<8x32xf32>
    %248 = math.exp %247 : vector<8x32xf32>
    %cst_66 = arith.constant 1.000000e+00 : f32
    %249 = vector.broadcast %cst_66 : f32 to vector<8x32xf32>
    %250 = arith.addf %249, %248 : vector<8x32xf32>
    %251 = arith.divf %249, %250 : vector<8x32xf32>
    %252 = vector.extract_strided_slice %233 {offsets = [0, 64], sizes = [8, 32], strides = [1, 1]} : vector<8x96xf32> to vector<8x32xf32>
    %253 = vector.extract_strided_slice %235 {offsets = [0, 64], sizes = [8, 32], strides = [1, 1]} : vector<8x96xf32> to vector<8x32xf32>
    %254 = arith.mulf %243, %253 : vector<8x32xf32>
    %255 = arith.addf %252, %254 : vector<8x32xf32>
    %256 = math.tanh %255 : vector<8x32xf32>
    %cst_67 = arith.constant 1.000000e+00 : f32
    %257 = vector.broadcast %cst_67 : f32 to vector<8x32xf32>
    %258 = arith.subf %257, %251 : vector<8x32xf32>
    %259 = arith.mulf %258, %256 : vector<8x32xf32>
    %260 = arith.mulf %251, %212 : vector<8x32xf32>
    %261 = arith.addf %259, %260 : vector<8x32xf32>
    %262 = arith.truncf %261 : vector<8x32xf32> to vector<8x32xbf16>
    %cst_68 = arith.constant dense<0.000000e+00> : vector<8x64xf32>
    %263 = tpu.matmul %262, %19, %cst_68 {dimension_numbers = #tpu.dot_dimension_numbers<[1], [1], [0], [0], [0, 0, 1, 0], [], []>} : vector<8x32xbf16>, vector<64x32xbf16>, vector<8x64xf32> -> vector<8x64xf32>
    %cst_69 = arith.constant dense<0xFF800000> : vector<64xf32>
    %264 = vector.multi_reduction <maximumf>, %263, %cst_69 [0] : vector<8x64xf32> to vector<64xf32>
    %265 = vector.shape_cast %264 : vector<64xf32> to vector<1x64xf32>
    %266 = vector.broadcast %265 : vector<1x64xf32> to vector<8x64xf32>
    %267 = arith.subf %263, %266 : vector<8x64xf32>
    %268 = math.exp %267 : vector<8x64xf32>
    %cst_70 = arith.constant dense<0.000000e+00> : vector<64xf32>
    %269 = vector.multi_reduction <add>, %268, %cst_70 [0] : vector<8x64xf32> to vector<64xf32>
    %270 = vector.shape_cast %269 : vector<64xf32> to vector<1x64xf32>
    %271 = vector.broadcast %270 : vector<1x64xf32> to vector<8x64xf32>
    %272 = arith.divf %268, %271 : vector<8x64xf32>
    %cst_71 = arith.constant dense<0.000000e+00> : vector<8xf32>
    %273 = vector.multi_reduction <add>, %272, %cst_71 [1] : vector<8x64xf32> to vector<8xf32>
    %274 = vector.shape_cast %273 : vector<8xf32> to vector<8x1xf32>
    %cst_72 = arith.constant 9.99999993E-9 : f32
    %275 = vector.broadcast %cst_72 : f32 to vector<8x1xf32>
    %276 = arith.addf %274, %275 : vector<8x1xf32>
    %277 = tpu.reciprocal %276 {approx = true} : vector<8x1xf32> -> vector<8x1xf32>
    %278 = vector.broadcast %277 : vector<8x1xf32> to vector<8x64xf32>
    %279 = arith.mulf %272, %278 : vector<8x64xf32>
    %280 = arith.truncf %279 : vector<8x64xf32> to vector<8x64xbf16>
    %cst_73 = arith.constant dense<0.000000e+00> : vector<8x96xf32>
    %281 = tpu.matmul %280, %21, %cst_73 {dimension_numbers = #tpu.dot_dimension_numbers<[1], [0], [0], [1], [0, 0, 1, 1], [], []>} : vector<8x64xbf16>, vector<64x96xbf16>, vector<8x96xf32> -> vector<8x96xf32>
    %282 = arith.addf %281, %10 : vector<8x96xf32>
    %cst_74 = arith.constant dense<0.000000e+00> : vector<8x96xf32>
    %283 = tpu.matmul %262, %5, %cst_74 {dimension_numbers = #tpu.dot_dimension_numbers<[1], [0], [0], [1], [0, 0, 1, 1], [], []>} : vector<8x32xbf16>, vector<32x96xbf16>, vector<8x96xf32> -> vector<8x96xf32>
    %284 = arith.addf %283, %13 : vector<8x96xf32>
    %285 = vector.extract_strided_slice %282 {offsets = [0, 0], sizes = [8, 32], strides = [1, 1]} : vector<8x96xf32> to vector<8x32xf32>
    %286 = vector.extract_strided_slice %284 {offsets = [0, 0], sizes = [8, 32], strides = [1, 1]} : vector<8x96xf32> to vector<8x32xf32>
    %287 = arith.addf %285, %286 : vector<8x32xf32>
    %288 = arith.negf %287 : vector<8x32xf32>
    %289 = math.exp %288 : vector<8x32xf32>
    %cst_75 = arith.constant 1.000000e+00 : f32
    %290 = vector.broadcast %cst_75 : f32 to vector<8x32xf32>
    %291 = arith.addf %290, %289 : vector<8x32xf32>
    %292 = arith.divf %290, %291 : vector<8x32xf32>
    %293 = vector.extract_strided_slice %282 {offsets = [0, 32], sizes = [8, 32], strides = [1, 1]} : vector<8x96xf32> to vector<8x32xf32>
    %294 = vector.extract_strided_slice %284 {offsets = [0, 32], sizes = [8, 32], strides = [1, 1]} : vector<8x96xf32> to vector<8x32xf32>
    %295 = arith.addf %293, %294 : vector<8x32xf32>
    %296 = arith.negf %295 : vector<8x32xf32>
    %297 = math.exp %296 : vector<8x32xf32>
    %cst_76 = arith.constant 1.000000e+00 : f32
    %298 = vector.broadcast %cst_76 : f32 to vector<8x32xf32>
    %299 = arith.addf %298, %297 : vector<8x32xf32>
    %300 = arith.divf %298, %299 : vector<8x32xf32>
    %301 = vector.extract_strided_slice %282 {offsets = [0, 64], sizes = [8, 32], strides = [1, 1]} : vector<8x96xf32> to vector<8x32xf32>
    %302 = vector.extract_strided_slice %284 {offsets = [0, 64], sizes = [8, 32], strides = [1, 1]} : vector<8x96xf32> to vector<8x32xf32>
    %303 = arith.mulf %292, %302 : vector<8x32xf32>
    %304 = arith.addf %301, %303 : vector<8x32xf32>
    %305 = math.tanh %304 : vector<8x32xf32>
    %cst_77 = arith.constant 1.000000e+00 : f32
    %306 = vector.broadcast %cst_77 : f32 to vector<8x32xf32>
    %307 = arith.subf %306, %300 : vector<8x32xf32>
    %308 = arith.mulf %307, %305 : vector<8x32xf32>
    %309 = arith.mulf %300, %261 : vector<8x32xf32>
    %310 = arith.addf %308, %309 : vector<8x32xf32>
    %311 = arith.truncf %310 : vector<8x32xf32> to vector<8x32xbf16>
    %cst_78 = arith.constant dense<0.000000e+00> : vector<8x64xf32>
    %312 = tpu.matmul %311, %19, %cst_78 {dimension_numbers = #tpu.dot_dimension_numbers<[1], [1], [0], [0], [0, 0, 1, 0], [], []>} : vector<8x32xbf16>, vector<64x32xbf16>, vector<8x64xf32> -> vector<8x64xf32>
    %cst_79 = arith.constant dense<0xFF800000> : vector<64xf32>
    %313 = vector.multi_reduction <maximumf>, %312, %cst_79 [0] : vector<8x64xf32> to vector<64xf32>
    %314 = vector.shape_cast %313 : vector<64xf32> to vector<1x64xf32>
    %315 = vector.broadcast %314 : vector<1x64xf32> to vector<8x64xf32>
    %316 = arith.subf %312, %315 : vector<8x64xf32>
    %317 = math.exp %316 : vector<8x64xf32>
    %cst_80 = arith.constant dense<0.000000e+00> : vector<64xf32>
    %318 = vector.multi_reduction <add>, %317, %cst_80 [0] : vector<8x64xf32> to vector<64xf32>
    %319 = vector.shape_cast %318 : vector<64xf32> to vector<1x64xf32>
    %320 = vector.broadcast %319 : vector<1x64xf32> to vector<8x64xf32>
    %321 = arith.divf %317, %320 : vector<8x64xf32>
    %cst_81 = arith.constant dense<0.000000e+00> : vector<8xf32>
    %322 = vector.multi_reduction <add>, %321, %cst_81 [1] : vector<8x64xf32> to vector<8xf32>
    %323 = vector.shape_cast %322 : vector<8xf32> to vector<8x1xf32>
    %cst_82 = arith.constant 9.99999993E-9 : f32
    %324 = vector.broadcast %cst_82 : f32 to vector<8x1xf32>
    %325 = arith.addf %323, %324 : vector<8x1xf32>
    %326 = tpu.reciprocal %325 {approx = true} : vector<8x1xf32> -> vector<8x1xf32>
    %327 = vector.broadcast %326 : vector<8x1xf32> to vector<8x64xf32>
    %328 = arith.mulf %321, %327 : vector<8x64xf32>
    %329 = arith.truncf %328 : vector<8x64xf32> to vector<8x64xbf16>
    %cst_83 = arith.constant dense<0.000000e+00> : vector<8x96xf32>
    %330 = tpu.matmul %329, %21, %cst_83 {dimension_numbers = #tpu.dot_dimension_numbers<[1], [0], [0], [1], [0, 0, 1, 1], [], []>} : vector<8x64xbf16>, vector<64x96xbf16>, vector<8x96xf32> -> vector<8x96xf32>
    %331 = arith.addf %330, %10 : vector<8x96xf32>
    %cst_84 = arith.constant dense<0.000000e+00> : vector<8x96xf32>
    %332 = tpu.matmul %311, %5, %cst_84 {dimension_numbers = #tpu.dot_dimension_numbers<[1], [0], [0], [1], [0, 0, 1, 1], [], []>} : vector<8x32xbf16>, vector<32x96xbf16>, vector<8x96xf32> -> vector<8x96xf32>
    %333 = arith.addf %332, %13 : vector<8x96xf32>
    %334 = vector.extract_strided_slice %331 {offsets = [0, 0], sizes = [8, 32], strides = [1, 1]} : vector<8x96xf32> to vector<8x32xf32>
    %335 = vector.extract_strided_slice %333 {offsets = [0, 0], sizes = [8, 32], strides = [1, 1]} : vector<8x96xf32> to vector<8x32xf32>
    %336 = arith.addf %334, %335 : vector<8x32xf32>
    %337 = arith.negf %336 : vector<8x32xf32>
    %338 = math.exp %337 : vector<8x32xf32>
    %cst_85 = arith.constant 1.000000e+00 : f32
    %339 = vector.broadcast %cst_85 : f32 to vector<8x32xf32>
    %340 = arith.addf %339, %338 : vector<8x32xf32>
    %341 = arith.divf %339, %340 : vector<8x32xf32>
    %342 = vector.extract_strided_slice %331 {offsets = [0, 32], sizes = [8, 32], strides = [1, 1]} : vector<8x96xf32> to vector<8x32xf32>
    %343 = vector.extract_strided_slice %333 {offsets = [0, 32], sizes = [8, 32], strides = [1, 1]} : vector<8x96xf32> to vector<8x32xf32>
    %344 = arith.addf %342, %343 : vector<8x32xf32>
    %345 = arith.negf %344 : vector<8x32xf32>
    %346 = math.exp %345 : vector<8x32xf32>
    %cst_86 = arith.constant 1.000000e+00 : f32
    %347 = vector.broadcast %cst_86 : f32 to vector<8x32xf32>
    %348 = arith.addf %347, %346 : vector<8x32xf32>
    %349 = arith.divf %347, %348 : vector<8x32xf32>
    %350 = vector.extract_strided_slice %331 {offsets = [0, 64], sizes = [8, 32], strides = [1, 1]} : vector<8x96xf32> to vector<8x32xf32>
    %351 = vector.extract_strided_slice %333 {offsets = [0, 64], sizes = [8, 32], strides = [1, 1]} : vector<8x96xf32> to vector<8x32xf32>
    %352 = arith.mulf %341, %351 : vector<8x32xf32>
    %353 = arith.addf %350, %352 : vector<8x32xf32>
    %354 = math.tanh %353 : vector<8x32xf32>
    %cst_87 = arith.constant 1.000000e+00 : f32
    %355 = vector.broadcast %cst_87 : f32 to vector<8x32xf32>
    %356 = arith.subf %355, %349 : vector<8x32xf32>
    %357 = arith.mulf %356, %354 : vector<8x32xf32>
    %358 = arith.mulf %349, %310 : vector<8x32xf32>
    %359 = arith.addf %357, %358 : vector<8x32xf32>
    %360 = arith.sitofp %190 : vector<8x1xi32> to vector<8x1xf32>
    %361 = vector.shape_cast %201 : vector<1x1xf32> to vector<1x1xf32>
    %362 = vector.broadcast %361 : vector<1x1xf32> to vector<8x1xf32>
    %cst_88 = arith.constant 0.000000e+00 : f32
    %363 = vector.broadcast %cst_88 : f32 to vector<8x94xf32>
    %364 = tpu.concatenate %130, %321, %359, %360, %362, %363 in 1 : vector<8x64xf32>, vector<8x64xf32>, vector<8x32xf32>, vector<8x1xf32>, vector<8x1xf32>, vector<8x94xf32> -> vector<8x256xf32>
    %c0_89 = arith.constant 0 : index
    %c0_90 = arith.constant 0 : index
    %c0_91 = arith.constant 0 : index
    %365 = vector.load %arg5[%c0_89, %c0_90, %c0_91] : memref<1x8x256xf32, #tpu.memory_space<vmem>>, vector<1x8x256xf32>
    %366 = vector.shape_cast %365 : vector<1x8x256xf32> to vector<8x256xf32>
    %367 = vector.shape_cast %364 : vector<8x256xf32> to vector<1x8x256xf32>
    tpu.vector_store %arg5[%c0_89, %c0_90, %c0_91], %367 {strides = array<i32>} : memref<1x8x256xf32, #tpu.memory_space<vmem>>, vector<1x8x256xf32>,
    return
  }
  func.func @transform_0(%arg0: i32) -> (i32, i32, i32) {
    %c0_i32 = arith.constant 0 : i32
    %c0_i32_0 = arith.constant 0 : i32
    %c0_i32_1 = arith.constant 0 : i32
    return %arg0, %c0_i32, %c0_i32_0 : i32, i32, i32
  }
  func.func @transform_1(%arg0: i32) -> (i32, i32, i32) {
    %c0_i32 = arith.constant 0 : i32
    %c0_i32_0 = arith.constant 0 : i32
    %c0_i32_1 = arith.constant 0 : i32
    return %arg0, %c0_i32, %c0_i32_0 : i32, i32, i32
  }
  func.func @transform_2(%arg0: i32) -> (i32, i32) {
    %c0_i32 = arith.constant 0 : i32
    %c0_i32_0 = arith.constant 0 : i32
    %c0_i32_1 = arith.constant 0 : i32
    return %c0_i32, %c0_i32_0 : i32, i32
  }
  func.func @transform_3(%arg0: i32) -> (i32, i32) {
    %c0_i32 = arith.constant 0 : i32
    %c0_i32_0 = arith.constant 0 : i32
    %c0_i32_1 = arith.constant 0 : i32
    return %c0_i32, %c0_i32_0 : i32, i32
  }
  func.func @transform_4(%arg0: i32) -> (i32, i32, i32) {
    %c0_i32 = arith.constant 0 : i32
    %c0_i32_0 = arith.constant 0 : i32
    %c0_i32_1 = arith.constant 0 : i32
    return %arg0, %c0_i32, %c0_i32_0 : i32, i32, i32
  }
}

</mosaic_0001>

<bundles_post_ra>
// kernel: slot_attention_grouping_hyper_forward.1
= control target key start
LH: loop header
LB: loop body
LE: loop exit
PB: predicated region body
PF: predicated region fallthrough
CT: control target
= control target key end

     0   :  { %s1656_s15 = smov 0   ;;  %s1995_s0 = inlined_call_operand.vmem [shape: bf16[2,64,32], index: 0, kind: input, shape index: {}]   ;;  %s1996_s1 = inlined_call_operand.vmem [shape: f32[2,8,32], index: 1, kind: input, shape index: {}]   ;;  %s1997_s2 = inlined_call_operand.vmem [shape: bf16[32,512], index: 2, kind: input, shape index: {}]   ;;  %s1998_s3 = inlined_call_operand.vmem [shape: f32[24,128], index: 3, kind: input, shape index: {}]   ;;  %s1999_s4 = inlined_call_operand.vmem [shape: f32[2,8,256], index: 4, kind: output, shape index: {}]  }
   0x1 LB: > { %s1420_s16 = sadd.s32 4294967295, %s1625_s15   ;;  %p1424_p0 = scmp.ge.s32.totalorder %s1625_s15, 1  ;;  %s1625_s15 = sphi %s1656_s15, %s14_s15  }
   0x2   : > { %p171_p1 = scmp.lt.s32.totalorder %s1625_s15, 3 }
   0x4   : > { %p172_p2 = pnand %p1424_p0, %p171_p1 }
   0x5   : > { %p201_p3 = scmp.lt.s32.totalorder (!%p172_p2), %s1420_s16, 1  ;;  %s1627_s29 = smov (!%p172_p2), 96  }
   0x6   : > { %175 = sbr.rel (%p172_p2) target bundleno = 6039 (0x1797), region = 36  ;;  %s1628_s20 = smov (!%p172_p2), 64  }
   0x7   : > { %s1629_s23 = smov (!%p172_p2), 32  }
   0xb   : > { %v1452_v0 = vld [vmem:[%s1997_s2 + $0x20] sm:$0xf]  ;;  %v1522_v1 = vld [vmem:[%s1997_s2 + $0x2c] sm:$0xf0]  ;;  %s2001_s16 = smov (!%p201_p3, %s1420_s16), 1  ;;  %vm281_vm0 = vcmask 261120  }
   0xc   : > { %v1448_v2 = vld [vmem:[%s1997_s2] sm:$0xf]  ;;  %v1453_v3 = vor.u32 %v1522_v1, %v1452_v0  ;;  %v1521_v4 = vld [vmem:[%s1997_s2 + $0xc] sm:$0xf0]  ;;  %s1515_s25 = sshll.u32 %s2001_s16, 5  ;;  %s1427_s12 = sshll.u32 %s2001_s16, 3 }
   0xd   : > { %v1449_v5 = vor.u32 %v1521_v4, %v1448_v2  ;;  %s205_s28 = scalar_lea.vmem %s1995_s0, %s1515_s25  ;;  %v1466_v14 = vld [vmem:[%s1997_s2 + $0x24] sm:$0xf]  ;;  %v1524_v15 = vld [vmem:[%s1997_s2 + $0x30] sm:$0xf0]  ;;  %s209_s17 = scalar_lea.vmem %s1996_s1, %s1427_s12  ;;  %vm356_vm1 = vcmask 523264  }
   0xe   : > { %300 = vmatpush.bf16.msra.mxu0 %v1453_v3  ;;  %v1517_v6 = vld [vmem:[%s205_s28] sm:$0xff]  ;;  %v1518_v7 = vld [vmem:[%s205_s28 + $0x8] sm:$0xff]  ;;  %v1519_v8 = vld [vmem:[%s205_s28 + $0x10] sm:$0xff]  ;;  %v1693_v16 = vor.u32 %v1524_v15, %v1466_v14 }
   0xf   : > { %v1520_v9 = vld [vmem:[%s205_s28 + $0x18] sm:$0xff]  ;;  %v1462_v18 = vld [vmem:[%s1997_s2 + $0x4] sm:$0xf]  ;;  %v1523_v19 = vld [vmem:[%s1997_s2 + $0x10] sm:$0xf0] }
  0x10   : > { %446 = vmatpush.bf16.msra.mxu3 %v1693_v16  ;;  %v1702_v20 = vor.u32 %v1523_v19, %v1462_v18  ;;  %v1711_v26 = vld [vmem:[%s209_s17] sm:$0xff] }
  0x11   : > { %v327_v27 = vpack.c.bf16 %v1711_v26, %v1711_v26  ;;  %v1780_v14 = vld [vmem:[%s1998_s3] ss:$0 sm:$0xff] }
  0x12   : > { %301 = vmatpush.bf16.msra.mxu0 %v1449_v5 }
  0x14   : > { %447 = vmatpush.bf16.msra.mxu3 %v1702_v20 }
  0x15   : > { %1454 = vmatmul.msk.bf16.vlgmr.msra.gmra.mxu0 %vm281_vm0, %v1517_v6 }
  0x17   : > { %1468 = vmatmul.msk.bf16.vlgmr.msra.gmra.mxu3 %vm281_vm0, %v327_v27 }
  0x25   : > { %1455 = vmatmul.msk.bf16.gmra.mxu0 %vm281_vm0, %v1518_v7  ;;  %v1768_v7 = vld [vmem:[%s1998_s3 + $0x1] ss:$0 sm:$0xff] }
  0x35   : > { %1456 = vmatmul.msk.bf16.gmra.mxu0 %vm281_vm0, %v1519_v8 }
  0x45   : > { %1457 = vmatmul.msk.bf16.gmra.mxu0 %vm281_vm0, %v1520_v9 }
  0x92   : > { %v303_v10 = vpop.f32.mrf.mxu0 }
  0x9a   : > { %v305_v11 = vpop.f32.mrf.mxu0  ;;  %v449_v8 = vpop.f32.mrf.mxu3 }
  0x9b   : > { %v323_v12 = vpack.c.bf16 %v305_v11, %v303_v10  ;;  %v450_v10 = vadd.f32 %v1768_v7, %v449_v8 }
  0x9d   : > { %400 = vrot.lane.b32.xlu2 %v323_v12, %s1627_s29  ;;  %v1733_v33 = vsel %vm281_vm0, %v323_v12, 0 }
  0xa2   : > { %v308_v13 = vpop.f32.mrf.mxu0 }
  0xa5   : > { %474 = vrot.lane.b32.xlu2 %v450_v10, %s1628_s20 }
  0xaa   : > { %v310_v17 = vpop.f32.mrf.mxu0 }
  0xab   : > { %v324_v25 = vpack.c.bf16 %v310_v17, %v308_v13  ;;  %v451_v13 = vpop.f32.mrf.mxu3 }
  0xad   : > { %v1728_v32 = vsel %vm281_vm0, %v324_v25, 0 }
  0xb2   : > { %v313_v21 = vpop.f32.mrf.mxu0 }
  0xba   : > { %v315_v22 = vpop.f32.mrf.mxu0 }
  0xbb   : > { %v325_v23 = vpack.c.bf16 %v315_v22, %v313_v21 }
  0xbd   : > { %404 = vrot.lane.b32.xlu1 %v325_v23, %s1627_s29  ;;  %v1723_v31 = vsel %vm281_vm0, %v325_v23, 0 }
  0xc2   : > { %v318_v24 = vpop.f32.mrf.mxu0 }
  0xc5   : > { %402 = vrot.lane.b32.xlu1 %v324_v25, %s1627_s29 }
  0xca   : > { %v320_v28 = vpop.f32.mrf.mxu0 }
  0xcb   : > { %v326_v29 = vpack.c.bf16 %v320_v28, %v318_v24 }
  0xcd   : > { %v1717_v30 = vsel %vm281_vm0, %v326_v29, 0  ;;  %406 = vrot.lane.b32.xlu0 %v326_v29, %s1627_s29 }
  0xce   : > { %347 = vmatpush.bf16.xpose.msra.mxu1 %v1717_v30  ;;  %507 = vmatpush.bf16.xpose.msrb.mxu3 %v1717_v30 }
  0xd6   : > { %348 = vmatpush.bf16.xpose.msra.mxu1 %v1723_v31  ;;  %508 = vmatpush.bf16.xpose.msrb.mxu3 %v1723_v31 }
  0xde   : > { %349 = vmatpush.bf16.xpose.msra.mxu1 %v1728_v32  ;;  %509 = vmatpush.bf16.xpose.msrb.mxu3 %v1728_v32 }
  0xe6   : > { %350 = vmatpush.bf16.xpose.msra.mxu1 %v1733_v33  ;;  %510 = vmatpush.bf16.xpose.msrb.mxu3 %v1733_v33 }
  0xed   : > { %1458 = vmatmul.msk.bf16.vlgmr.msra.gmra.mxu1 %vm281_vm0, %v327_v27 }
  0xee   : > { %577 = vmatpush.bf16.msrb.mxu1 %v1693_v16 }
  0xf2   : > { %578 = vmatpush.bf16.msrb.mxu1 %v1702_v20 }
  0xf6   : > { %704 = vmatpush.bf16.msra.mxu1 %v1693_v16 }
  0xf7   : > { %v1754_v37 = vpop.permute.xlu2 %400 }
  0xfa   : > { %705 = vmatpush.bf16.msra.mxu1 %v1702_v20 }
 0x12f   : > { %v1742_v34 = vpop.permute.xlu1 %404 }
 0x137   : > { %v1750_v36 = vpop.permute.xlu1 %402 }
 0x13f   : > { %v1744_v35 = vpop.permute.xlu0 %406 }
 0x140   : > { %419 = vmatpush.bf16.msra.mxu2 %v1744_v35  ;;  %689 = vmatpush.bf16.msra.mxu3 %v1744_v35 }
 0x144   : > { %420 = vmatpush.bf16.msra.mxu2 %v1742_v34  ;;  %690 = vmatpush.bf16.msra.mxu3 %v1742_v34 }
 0x148   : > { %421 = vmatpush.bf16.msra.mxu2 %v1750_v36  ;;  %691 = vmatpush.bf16.msra.mxu3 %v1750_v36 }
 0x14c   : > { %422 = vmatpush.bf16.msra.mxu2 %v1754_v37  ;;  %692 = vmatpush.bf16.msra.mxu3 %v1754_v37 }
 0x150   : > { %562 = vmatpush.bf16.msrb.mxu2 %v1744_v35 }
 0x154   : > { %563 = vmatpush.bf16.msrb.mxu2 %v1742_v34 }
 0x158   : > { %564 = vmatpush.bf16.msrb.mxu2 %v1750_v36 }
 0x15c   : > { %565 = vmatpush.bf16.msrb.mxu2 %v1754_v37 }
 0x16a   : > { %v352_v38 = vpop.f32.mrf.mxu1 }
 0x16b   : > { %v357_v39 = vsel %vm356_vm1, %v352_v38, -inf }
 0x16c   : > { %v358_v40 = vrot.slane %v357_v39, 4 }
 0x16e   : > { %v359_v41 = vmax.f32 %v357_v39, %v358_v40  ;;  %v475_v40 = vpop.permute.xlu2 %474 }
 0x170   : > { %v360_v42 = vrot.slane %v359_v41, 2 }
 0x172   : > { %v361_v43 = vmax.f32 %v359_v41, %v360_v42  ;;  %v354_v44 = vpop.f32.mrf.mxu1 }
 0x174   : > { %v362_v45 = vrot.slane %v361_v43, 1 }
 0x176   : > { %v363_v46 = vmax.f32 %v361_v43, %v362_v45 }
 0x178   : > { %v364_v47 = vsub.f32 %v352_v38, %v363_v46 }
 0x17a   : > { %v365_v48 = vmul.f32 1.442695, %v364_v47 }
 0x17c   : > { %1545 = vpow2.f32 %v365_v48 }
 0x182   : > { %v1546_v49 = vpop.eup %1545 }
 0x183   : > { %v367_v50 = vsel %vm356_vm1, %v1546_v49, 0.0 }
 0x184   : > { %v368_v51 = vrot.slane %v367_v50, 4 }
 0x186   : > { %v369_v52 = vadd.f32 %v368_v51, %v367_v50 }
 0x188   : > { %v370_v53 = vrot.slane %v369_v52, 2 }
 0x18a   : > { %v371_v54 = vadd.f32 %v370_v53, %v369_v52 }
 0x18c   : > { %v372_v55 = vrot.slane %v371_v54, 1 }
 0x18e   : > { %v373_v56 = vadd.f32 %v372_v55, %v371_v54 }
 0x190   : > { %1547 = vrcp.f32 %v373_v56  ;;  %v385_v60 = vand.u32 2147483648, %v373_v56  ;;  %v383_v62 = vand.u32 2147483647, %v373_v56  ;;  %vm379_vm3 = vweird.f32 %v373_v56 }
 0x192   : > { %v386_v0 = vor.u32 1.1754944e-38, %v385_v60  ;;  %vm384_vm5 = vcmp.eq.f32.partialorder %v383_v62, 8.507059e+37 }
 0x196   : > { %v1548_v57 = vpop.eup %1547 }
 0x197   : > { %v375_v58 = vmul.f32 %v1548_v57, %v373_v56  ;;  %vm380_vm2 = vweird.f32 %v1548_v57 }
 0x198   : > { %vm381_vm4 = vmor %vm379_vm3, %vm380_vm2 }
 0x199   : > { %v376_v59 = vsub.f32 1.0, %v375_v58 }
 0x19b   : > { %v377_v61 = vmul.f32 %v1548_v57, %v376_v59 }
 0x19d   : > { %v378_v63 = vadd.f32 %v1548_v57, %v377_v61 }
 0x19f   : > { %v382_v1 = vsel %vm381_vm4, %v1548_v57, %v378_v63 }
 0x1a0   : > { %v387_v2 = vsel %vm384_vm5, %v386_v0, %v382_v1 }
 0x1a1   : > { %v388_v3 = vmul.f32 %v1546_v49, %v387_v2 }
 0x1a3   : > { %v389_v4 = vsel %vm356_vm1, %v388_v3, 0.0 }
 0x1a4   : > { %390 = vadd.xlane.f32.xlu0 %v389_v4 }
 0x217   : > { %v391_v5 = vpop.xlane.xlu0 %390 }
 0x218   : > { %v392_v6 = vadd.f32 1e-08, %v391_v5 }
 0x21a   : > { %1549 = vrcp.f32 %v392_v6 }
 0x220   : > { %v1550_v9 = vpop.eup %1549 }
 0x221   : > { %v394_v11 = vmul.f32 %v1550_v9, %v388_v3 }
 0x223   : > { %v395_v12 = vpack.c.bf16 %v394_v11, %v394_v11 }
 0x225   : > { %1459 = vmatmul.msk.bf16.vlgmr.msra.gmra.mxu2 %vm356_vm1, %v395_v12 }
 0x226   : > { %634 = vmatpush.bf16.xpose.msra.mxu2 %v1717_v30 }
 0x22e   : > { %635 = vmatpush.bf16.xpose.msra.mxu2 %v1723_v31 }
 0x236   : > { %636 = vmatpush.bf16.xpose.msra.mxu2 %v1728_v32 }
 0x23e   : > { %637 = vmatpush.bf16.xpose.msra.mxu2 %v1733_v33 }
 0x2a8   : > { %v424_v15 = vpop.f32.mrf.mxu2 }
 0x2a9   : > { %v425_v17 = vadd.f32 %v1780_v14, %v424_v15 }
 0x2ab   : > { %v453_v18 = vadd.f32 %v450_v10, %v425_v17 }
 0x2ad   : > { %v1469_v19 = vmul.f32 -1.442695, %v453_v18 }
 0x2af   : > { %1551 = vpow2.f32 %v1469_v19 }
 0x2b0   : > { %v426_v21 = vpop.f32.mrf.mxu2 }
 0x2b5   : > { %v1552_v22 = vpop.eup %1551 }
 0x2b6   : > { %v457_v23 = vadd.f32 1.0, %v1552_v22 }
 0x2b8   : > { %1553 = vrcp.f32 %v457_v23  ;;  %v469_v28 = vand.u32 2147483648, %v457_v23  ;;  %v467_v38 = vand.u32 2147483647, %v457_v23  ;;  %vm463_vm7 = vweird.f32 %v457_v23 }
 0x2ba   : > { %v470_v41 = vor.u32 1.1754944e-38, %v469_v28  ;;  %vm468_vm9 = vcmp.eq.f32.partialorder %v467_v38, 8.507059e+37 }
 0x2be   : > { %v1554_v24 = vpop.eup %1553 }
 0x2bf   : > { %v459_v25 = vmul.f32 %v1554_v24, %v457_v23  ;;  %vm464_vm6 = vweird.f32 %v1554_v24 }
 0x2c0   : > { %vm465_vm8 = vmor %vm463_vm7, %vm464_vm6 }
 0x2c1   : > { %v460_v27 = vsub.f32 1.0, %v459_v25 }
 0x2c3   : > { %v461_v29 = vmul.f32 %v1554_v24, %v460_v27 }
 0x2c5   : > { %v462_v39 = vadd.f32 %v1554_v24, %v461_v29 }
 0x2c7   : > { %v466_v42 = vsel %vm465_vm8, %v1554_v24, %v462_v39 }
 0x2c8   : > { %v471_v43 = vsel %vm468_vm9, %v470_v41, %v466_v42 }
 0x2c9   : > { %v477_v44 = vmul.f32 %v475_v40, %v471_v43  ;;  %v484_v49 = vsub.f32 1.0, %v471_v43 }
 0x2cb   : > { %479 = vrot.lane.b32.xlu1 %v477_v44, %s1628_s20 }
 0x2d3   : > { %491 = vrot.lane.b32.xlu1 %v1711_v26, %s1629_s23 }
 0x33d   : > { %v480_v45 = vpop.permute.xlu1 %479 }
 0x33e   : > { %v482_v46 = vadd.f32 %v480_v45, %v425_v17 }
 0x340   : > { %1555 = vtanh.f32 %v482_v46 }
 0x345   : > { %v492_v48 = vpop.permute.xlu1 %491 }
 0x346   : > { %v1556_v47 = vpop.eup %1555  ;;  %v494_v51 = vmul.f32 %v492_v48, %v471_v43 }
 0x347   : > { %486 = vrot.lane.b32.xlu2 %v1556_v47, %s1627_s29 }
 0x3a1   : > { %v487_v50 = vpop.permute.xlu2 %486 }
 0x3a2   : > { %v489_v52 = vmul.f32 %v487_v50, %v484_v49 }
 0x3a4   : > { %v1787_v53 = vadd.f32 %v494_v51, %v489_v52 }
 0x3a6   : > { %v496_v54 = vpack.c.bf16 %v1787_v53, %v1787_v53 }
 0x3a8   : > { %498 = vrot.lane.b32.xlu2 %v496_v54, %s1627_s29 }
 0x402   : > { %v499_v55 = vpop.permute.xlu2 %498 }
 0x403   : > { %1470 = vmatmul.msk.bf16.vlgmr.msrb.gmra.mxu3 %vm281_vm0, %v499_v55  ;;  %1472 = vmatmul.msk.bf16.vlgmr.msrb.gmra.mxu1 %vm281_vm0, %v499_v55 }
 0x480   : > { %v580_v56 = vpop.f32.mrf.mxu1 }
 0x481   : > { %v581_v57 = vadd.f32 %v1768_v7, %v580_v56 }
 0x483   : > { %605 = vrot.lane.b32.xlu2 %v581_v57, %s1628_s20 }
 0x486   : > { %v512_v58 = vpop.f32.mrf.mxu3 }
 0x487   : > { %v516_v59 = vsel %vm356_vm1, %v512_v58, -inf }
 0x488   : > { %v517_v60 = vrot.slane %v516_v59, 4  ;;  %v582_v61 = vpop.f32.mrf.mxu1 }
 0x48a   : > { %v518_v62 = vmax.f32 %v516_v59, %v517_v60 }
 0x48c   : > { %v519_v63 = vrot.slane %v518_v62, 2 }
 0x48e   : > { %v520_v0 = vmax.f32 %v518_v62, %v519_v63  ;;  %v514_v1 = vpop.f32.mrf.mxu3 }
 0x490   : > { %v521_v2 = vrot.slane %v520_v0, 1 }
 0x492   : > { %v522_v3 = vmax.f32 %v520_v0, %v521_v2 }
 0x494   : > { %v523_v4 = vsub.f32 %v512_v58, %v522_v3  ;;  %v1498_v3 = vld [vmem:[%s1997_s2 + $0x2c] sm:$0xf] }
 0x496   : > { %v524_v5 = vmul.f32 1.442695, %v523_v4  ;;  %v1528_v4 = vld [vmem:[%s1997_s2 + $0x38] sm:$0xf0] }
 0x498   : > { %1557 = vpow2.f32 %v524_v5  ;;  %v1499_v5 = vor.u32 %v1528_v4, %v1498_v3 }
 0x49e   : > { %v1558_v6 = vpop.eup %1557 }
 0x49f   : > { %v526_v8 = vsel %vm356_vm1, %v1558_v6, 0.0 }
 0x4a0   : > { %v527_v9 = vrot.slane %v526_v8, 4 }
 0x4a2   : > { %v528_v10 = vadd.f32 %v527_v9, %v526_v8  ;;  %v1527_v8 = vld [vmem:[%s1997_s2 + $0x18] sm:$0xf0]  ;;  %v938_v9 = vsel %vm356_vm1, %v1499_v5, 0 }
 0x4a3   : > { %946 = vmatpush.bf16.xpose.msrb.mxu1 %v938_v9 }
 0x4a4   : > { %v529_v11 = vrot.slane %v528_v10, 2 }
 0x4a6   : > { %v530_v12 = vadd.f32 %v529_v11, %v528_v10 }
 0x4a8   : > { %v531_v13 = vrot.slane %v530_v12, 1 }
 0x4aa   : > { %v532_v15 = vadd.f32 %v531_v13, %v530_v12 }
 0x4ac   : > { %1559 = vrcp.f32 %v532_v15  ;;  %v544_v21 = vand.u32 2147483648, %v532_v15  ;;  %v542_v23 = vand.u32 2147483647, %v532_v15  ;;  %vm538_vm11 = vweird.f32 %v532_v15 }
 0x4ae   : > { %v545_v25 = vor.u32 1.1754944e-38, %v544_v21  ;;  %vm543_vm13 = vcmp.eq.f32.partialorder %v542_v23, 8.507059e+37 }
 0x4b2   : > { %v1560_v17 = vpop.eup %1559 }
 0x4b3   : > { %v534_v18 = vmul.f32 %v1560_v17, %v532_v15  ;;  %vm539_vm10 = vweird.f32 %v1560_v17 }
 0x4b4   : > { %vm540_vm12 = vmor %vm538_vm11, %vm539_vm10 }
 0x4b5   : > { %v535_v19 = vsub.f32 1.0, %v534_v18 }
 0x4b7   : > { %v536_v22 = vmul.f32 %v1560_v17, %v535_v19 }
 0x4b9   : > { %v537_v24 = vadd.f32 %v1560_v17, %v536_v22 }
 0x4bb   : > { %v541_v27 = vsel %vm540_vm12, %v1560_v17, %v537_v24  ;;  %vm806_vm12 = vcmask 130112  }
 0x4bc   : > { %v546_v28 = vsel %vm543_vm13, %v545_v25, %v541_v27  ;;  %vm822_vm13 = vcmask 130048  }
 0x4bd   : > { %v547_v29 = vmul.f32 %v1558_v6, %v546_v28  ;;  %v1494_v6 = vld [vmem:[%s1997_s2 + $0xc] sm:$0xf] }
 0x4be   : > { %v1495_v10 = vor.u32 %v1527_v8, %v1494_v6 }
 0x4bf   : > { %v548_v38 = vsel %vm356_vm1, %v547_v29, 0.0 }
 0x4c0   : > { %549 = vadd.xlane.f32.xlu1 %v548_v38  ;;  %v935_v11 = vsel %vm356_vm1, %v1495_v10, 0 }
 0x4c1   : > { %947 = vmatpush.bf16.xpose.msrb.mxu1 %v935_v11 }
 0x533   : > { %v550_v39 = vpop.xlane.xlu1 %549 }
 0x534   : > { %v551_v40 = vadd.f32 1e-08, %v550_v39 }
 0x536   : > { %1561 = vrcp.f32 %v551_v40 }
 0x53c   : > { %v1562_v41 = vpop.eup %1561 }
 0x53d   : > { %v553_v42 = vmul.f32 %v1562_v41, %v547_v29 }
 0x53f   : > { %v554_v43 = vpack.c.bf16 %v553_v42, %v553_v42 }
 0x541   : > { %1471 = vmatmul.msk.bf16.vlgmr.msrb.gmra.mxu2 %vm356_vm1, %v554_v43 }
 0x542   : > { %962 = vmatpush.bf16.xpose.msrb.mxu2 %v1717_v30 }
 0x54a   : > { %963 = vmatpush.bf16.xpose.msrb.mxu2 %v1723_v31 }
 0x552   : > { %964 = vmatpush.bf16.xpose.msrb.mxu2 %v1728_v32 }
 0x55a   : > { %965 = vmatpush.bf16.xpose.msrb.mxu2 %v1733_v33 }
 0x5c4   : > { %v567_v44 = vpop.f32.mrf.mxu2 }
 0x5c5   : > { %v568_v45 = vadd.f32 %v1780_v14, %v567_v44 }
 0x5c7   : > { %v584_v46 = vadd.f32 %v581_v57, %v568_v45  ;;  %v606_v57 = vpop.permute.xlu2 %605 }
 0x5c9   : > { %v1473_v47 = vmul.f32 -1.442695, %v584_v46 }
 0x5cb   : > { %1563 = vpow2.f32 %v1473_v47 }
 0x5cc   : > { %v569_v48 = vpop.f32.mrf.mxu2 }
 0x5d1   : > { %v1564_v49 = vpop.eup %1563 }
 0x5d2   : > { %v588_v50 = vadd.f32 1.0, %v1564_v49 }
 0x5d4   : > { %1565 = vrcp.f32 %v588_v50  ;;  %v600_v55 = vand.u32 2147483648, %v588_v50  ;;  %v598_v58 = vand.u32 2147483647, %v588_v50  ;;  %vm594_vm15 = vweird.f32 %v588_v50 }
 0x5d6   : > { %v601_v60 = vor.u32 1.1754944e-38, %v600_v55  ;;  %vm599_vm3 = vcmp.eq.f32.partialorder %v598_v58, 8.507059e+37 }
 0x5da   : > { %v1566_v51 = vpop.eup %1565 }
 0x5db   : > { %v590_v52 = vmul.f32 %v1566_v51, %v588_v50  ;;  %vm595_vm14 = vweird.f32 %v1566_v51 }
 0x5dc   : > { %vm596_vm2 = vmor %vm594_vm15, %vm595_vm14 }
 0x5dd   : > { %v591_v54 = vsub.f32 1.0, %v590_v52 }
 0x5df   : > { %v592_v56 = vmul.f32 %v1566_v51, %v591_v54 }
 0x5e1   : > { %v593_v59 = vadd.f32 %v1566_v51, %v592_v56 }
 0x5e3   : > { %v597_v61 = vsel %vm596_vm2, %v1566_v51, %v593_v59 }
 0x5e4   : > { %v602_v62 = vsel %vm599_vm3, %v601_v60, %v597_v61 }
 0x5e5   : > { %v608_v63 = vmul.f32 %v606_v57, %v602_v62  ;;  %v615_v12 = vsub.f32 1.0, %v602_v62  ;;  %v621_v15 = vmul.f32 %v602_v62, %v1787_v53  ;;  %v248_v57 = vld [vmem:[%s1998_s3 + $0x10] sm:$0xff]  ;;  %v247_v62 = vld [vmem:[%s1998_s3 + $0x8] sm:$0xff] }
 0x5e6   : > { %863 = vmatpush.msrb.mxu3 %v248_v57  ;;  %1478 = vmatpush.xpose.msk.msrb.mxu0 %vm281_vm0, %v248_v57 }
 0x5e7   : > { %610 = vrot.lane.b32.xlu2 %v608_v63, %s1628_s20 }
 0x5e8   : > { %864 = vmatpush.msrb.mxu3 %v247_v62 }
 0x5ea   : > { %1479 = vmatpush.xpose.msk.msrb.mxu0 %vm281_vm0, %v247_v62 }
 0x641   : > { %v611_v0 = vpop.permute.xlu2 %610 }
 0x642   : > { %v613_v1 = vadd.f32 %v611_v0, %v568_v45 }
 0x644   : > { %1567 = vtanh.f32 %v613_v1 }
 0x64a   : > { %v1568_v2 = vpop.eup %1567 }
 0x64b   : > { %617 = vrot.lane.b32.xlu2 %v1568_v2, %s1627_s29 }
 0x6a5   : > { %v618_v13 = vpop.permute.xlu2 %617 }
 0x6a6   : > { %v620_v17 = vmul.f32 %v618_v13, %v615_v12 }
 0x6a8   : > { %v1822_v18 = vadd.f32 %v621_v15, %v620_v17 }
 0x6aa   : > { %v623_v19 = vpack.c.bf16 %v1822_v18, %v1822_v18 }
 0x6ac   : > { %625 = vrot.lane.b32.xlu0 %v623_v19, %s1627_s29 }
 0x71e   : > { %v626_v21 = vpop.permute.xlu0 %625 }
 0x71f   : > { %1474 = vmatmul.msk.bf16.vlgmr.msra.gmra.mxu2 %vm281_vm0, %v626_v21  ;;  %1476 = vmatmul.msk.bf16.vlgmr.msra.gmra.mxu1 %vm281_vm0, %v626_v21 }
 0x720   : > { %1093 = vmatpush.bf16.xpose.msra.mxu1 %v1717_v30  ;;  %1220 = vmatpush.bf16.xpose.msra.mxu2 %v1717_v30 }
 0x728   : > { %1094 = vmatpush.bf16.xpose.msra.mxu1 %v1723_v31  ;;  %1221 = vmatpush.bf16.xpose.msra.mxu2 %v1723_v31 }
 0x730   : > { %1095 = vmatpush.bf16.xpose.msra.mxu1 %v1728_v32  ;;  %1222 = vmatpush.bf16.xpose.msra.mxu2 %v1728_v32 }
 0x738   : > { %1096 = vmatpush.bf16.xpose.msra.mxu1 %v1733_v33  ;;  %1223 = vmatpush.bf16.xpose.msra.mxu2 %v1733_v33 }
 0x79c   : > { %v707_v53 = vpop.f32.mrf.mxu1 }
 0x79d   : > { %v708_v22 = vadd.f32 %v1768_v7, %v707_v53 }
 0x79f   : > { %732 = vrot.lane.b32.xlu0 %v708_v22, %s1628_s20 }
 0x7a2   : > { %v639_v23 = vpop.f32.mrf.mxu2 }
 0x7a3   : > { %v643_v30 = vsel %vm356_vm1, %v639_v23, -inf }
 0x7a4   : > { %v644_v24 = vrot.slane %v643_v30, 4  ;;  %v709_v25 = vpop.f32.mrf.mxu1 }
 0x7a6   : > { %v645_v27 = vmax.f32 %v643_v30, %v644_v24 }
 0x7a8   : > { %v646_v31 = vrot.slane %v645_v27, 2 }
 0x7aa   : > { %v647_v28 = vmax.f32 %v645_v27, %v646_v31  ;;  %v641_v29 = vpop.f32.mrf.mxu2 }
 0x7ac   : > { %v648_v38 = vrot.slane %v647_v28, 1 }
 0x7ae   : > { %v649_v32 = vmax.f32 %v647_v28, %v648_v38 }
 0x7b0   : > { %v650_v39 = vsub.f32 %v639_v23, %v649_v32 }
 0x7b2   : > { %v651_v40 = vmul.f32 1.442695, %v650_v39 }
 0x7b4   : > { %1569 = vpow2.f32 %v651_v40 }
 0x7ba   : > { %v1570_v33 = vpop.eup %1569 }
 0x7bb   : > { %v653_v41 = vsel %vm356_vm1, %v1570_v33, 0.0 }
 0x7bc   : > { %v654_v42 = vrot.slane %v653_v41, 4 }
 0x7be   : > { %v655_v43 = vadd.f32 %v654_v42, %v653_v41  ;;  %v791_v41 = vmul.f32 %v247_v62, %v247_v62  ;;  %v792_v42 = vmul.f32 %v248_v57, %v248_v57 }
 0x7c0   : > { %v656_v44 = vrot.slane %v655_v43, 2 }
 0x7c2   : > { %v657_v45 = vadd.f32 %v656_v44, %v655_v43  ;;  %v793_v43 = vsel %vm281_vm0, %v791_v41, 0.0  ;;  %v796_v44 = vsel %vm281_vm0, %v792_v42, 0.0 }
 0x7c4   : > { %v658_v46 = vrot.slane %v657_v45, 1 }
 0x7c6   : > { %v659_v47 = vadd.f32 %v658_v46, %v657_v45 }
 0x7c8   : > { %1571 = vrcp.f32 %v659_v47  ;;  %v671_v51 = vand.u32 2147483648, %v659_v47  ;;  %v669_v54 = vand.u32 2147483647, %v659_v47  ;;  %vm665_vm5 = vweird.f32 %v659_v47 }
 0x7ca   : > { %v672_v56 = vor.u32 1.1754944e-38, %v671_v51  ;;  %vm670_vm7 = vcmp.eq.f32.partialorder %v669_v54, 8.507059e+37 }
 0x7ce   : > { %v1572_v48 = vpop.eup %1571 }
 0x7cf   : > { %v661_v49 = vmul.f32 %v1572_v48, %v659_v47  ;;  %vm666_vm4 = vweird.f32 %v1572_v48  ;;  %v801_v47 = vlaneseq }
 0x7d0   : > { %vm667_vm6 = vmor %vm665_vm5, %vm666_vm4 }
 0x7d1   : > { %v662_v50 = vsub.f32 1.0, %v661_v49 }
 0x7d3   : > { %v663_v52 = vmul.f32 %v1572_v48, %v662_v50 }
 0x7d5   : > { %v664_v55 = vadd.f32 %v1572_v48, %v663_v52 }
 0x7d7   : > { %v668_v58 = vsel %vm667_vm6, %v1572_v48, %v664_v55  ;;  %v802_v48 = vand.u32 127, %v801_v47 }
 0x7d8   : > { %v673_v59 = vsel %vm670_vm7, %v672_v56, %v668_v58 }
 0x7d9   : > { %v1841_v60 = vmul.f32 %v1570_v33, %v673_v59  ;;  %v804_v49 = vadd.s32 4294967288, %v802_v48 }
 0x7db   : > { %v675_v61 = vsel %vm356_vm1, %v1841_v60, 0.0 }
 0x7dc   : > { %676 = vadd.xlane.f32.xlu2 %v675_v61 }
 0x7e4   : > { %794 = vadd.xlane.f32.xlu2 %v793_v43 }
 0x84f   : > { %v677_v63 = vpop.xlane.xlu2 %676 }
 0x850   : > { %v678_v0 = vadd.f32 1e-08, %v677_v63 }
 0x852   : > { %1573 = vrcp.f32 %v678_v0 }
 0x857   : > { %v795_v51 = vpop.xlane.xlu2 %794 }
 0x858   : > { %v1574_v1 = vpop.eup %1573  ;;  %v803_v54 = vperm.slane %v795_v51, %v802_v48 }
 0x859   : > { %v680_v2 = vmul.f32 %v1574_v1, %v1841_v60 }
 0x85b   : > { %v681_v3 = vpack.c.bf16 %v680_v2, %v680_v2 }
 0x85d   : > { %1475 = vmatmul.msk.bf16.vlgmr.msra.gmra.mxu3 %vm356_vm1, %v681_v3 }
 0x85e   : > { %1017 = vmatpush.bf16.msra.mxu3 %v1744_v35 }
 0x862   : > { %1018 = vmatpush.bf16.msra.mxu3 %v1742_v34 }
 0x866   : > { %1019 = vmatpush.bf16.msra.mxu3 %v1750_v36 }
 0x86a   : > { %1020 = vmatpush.bf16.msra.mxu3 %v1754_v37 }
 0x8e0   : > { %v694_v4 = vpop.f32.mrf.mxu3 }
 0x8e1   : > { %v695_v5 = vadd.f32 %v1780_v14, %v694_v4 }
 0x8e3   : > { %v711_v6 = vadd.f32 %v708_v22, %v695_v5  ;;  %v733_v22 = vpop.permute.xlu0 %732 }
 0x8e5   : > { %v1477_v8 = vmul.f32 -1.442695, %v711_v6 }
 0x8e7   : > { %1575 = vpow2.f32 %v1477_v8 }
 0x8e8   : > { %v696_v9 = vpop.f32.mrf.mxu3 }
 0x8e9   : > { %v1489_v9 = vld [vmem:[%s1997_s2 + $0x28] sm:$0xf] }
 0x8ed   : > { %v1576_v10 = vpop.eup %1575 }
 0x8ee   : > { %v715_v11 = vadd.f32 1.0, %v1576_v10  ;;  %v1526_v10 = vld [vmem:[%s1997_s2 + $0x34] sm:$0xf0] }
 0x8f0   : > { %1577 = vrcp.f32 %v715_v11  ;;  %v727_v17 = vand.u32 2147483648, %v715_v11  ;;  %v725_v21 = vand.u32 2147483647, %v715_v11  ;;  %vm721_vm9 = vweird.f32 %v715_v11 }
 0x8f2   : > { %v728_v23 = vor.u32 1.1754944e-38, %v727_v17  ;;  %vm726_vm11 = vcmp.eq.f32.partialorder %v725_v21, 8.507059e+37 }
 0x8f6   : > { %v1578_v12 = vpop.eup %1577 }
 0x8f7   : > { %v717_v13 = vmul.f32 %v1578_v12, %v715_v11  ;;  %vm722_vm8 = vweird.f32 %v1578_v12  ;;  %v1485_v11 = vld [vmem:[%s1997_s2 + $0x8] sm:$0xf] }
 0x8f8   : > { %vm723_vm10 = vmor %vm721_vm9, %vm722_vm8 }
 0x8f9   : > { %v718_v15 = vsub.f32 1.0, %v717_v13  ;;  %v1525_v13 = vld [vmem:[%s1997_s2 + $0x14] sm:$0xf0] }
 0x8fb   : > { %v719_v19 = vmul.f32 %v1578_v12, %v718_v15  ;;  %v1486_v15 = vor.u32 %v1525_v13, %v1485_v11 }
 0x8fd   : > { %v720_v53 = vadd.f32 %v1578_v12, %v719_v19 }
 0x8ff   : > { %v724_v30 = vsel %vm723_vm10, %v1578_v12, %v720_v53  ;;  %v1490_v12 = vor.u32 %v1526_v10, %v1489_v9 }
 0x900   : > { %v729_v24 = vsel %vm726_vm11, %v728_v23, %v724_v30  ;;  %v1630_v30 = vmov 0.0  }
 0x901   : > { %v735_v25 = vmul.f32 %v733_v22, %v729_v24  ;;  %v742_v29 = vsub.f32 1.0, %v729_v24  ;;  %v748_v32 = vmul.f32 %v729_v24, %v1822_v18  ;;  %911 = vmatpush.bf16.msra.mxu0 %v1490_v12 }
 0x903   : > { %737 = vrot.lane.b32.xlu1 %v735_v25, %s1628_s20 }
 0x905   : > { %912 = vmatpush.bf16.msra.mxu0 %v1486_v15 }
 0x92d   : > { %797 = vadd.xlane.f32.xlu1 %v796_v44 }
 0x975   : > { %v738_v27 = vpop.permute.xlu1 %737 }
 0x976   : > { %v740_v31 = vadd.f32 %v738_v27, %v695_v5  ;;  %v1543_v27 = vld [vmem:[%s1998_s3 + $0x2] ss:$0 sm:$0xff] }
 0x978   : > { %1579 = vtanh.f32 %v740_v31 }
 0x97e   : > { %v1580_v28 = vpop.eup %1579 }
 0x97f   : > { %744 = vrot.lane.b32.xlu0 %v1580_v28, %s1627_s29 }
 0x9a0   : > { %v798_v50 = vpop.xlane.xlu1 %797 }
 0x9a1   : > { %v805_v52 = vperm.slane %v798_v50, %v804_v49 }
 0x9a3   : > { %v807_v59 = vsel %vm806_vm12, %v805_v52, %v803_v54 }
 0x9f1   : > { %v745_v38 = vpop.permute.xlu0 %744 }
 0x9f2   : > { %v747_v39 = vmul.f32 %v745_v38, %v742_v29 }
 0x9f4   : > { %v1863_v40 = vadd.f32 %v748_v32, %v747_v39  ;;  %v1544_v39 = vld [vmem:[%s1998_s3 + $0x3] ss:$0 sm:$0xff] }
 0x9f6   : > { %759 = vrot.lane.b32.xlu0 %v1863_v40, %s1627_s29  ;;  %v750_v33 = vmul.f32 %v1863_v40, %v1863_v40 }
 0x9fe   : > { %752 = vrot.lane.b32.xlu0 %v750_v33, %s1627_s29 }
 0xa68   : > { %v760_v18 = vpop.permute.xlu0 %759 }
 0xa69   : > { %1480 = vmatmul.msk.f32.vlgmr.msrb.gmra.mxu0 %vm281_vm0, %v760_v18 }
 0xa6a   : > { %1032 = vmatpush.bf16.msrb.mxu0 %v1693_v16 }
 0xa6e   : > { %1033 = vmatpush.bf16.msrb.mxu0 %v1702_v20 }
 0xa70   : > { %v753_v45 = vpop.permute.xlu0 %752 }
 0xa71   : > { %v755_v46 = vsel %vm281_vm0, %v753_v45, 0.0 }
 0xa72   : > { %756 = vadd.xlane.f32.xlu0 %v755_v46 }
 0xae5   : > { %v757_v58 = vpop.xlane.xlu0 %756 }
 0xae6   : > { %v786_v55 = vpop.f32.mrf.mxu0 }
 0xae7   : > { %v789_v56 = vmul.f32 2.0, %v786_v55 }
 0xae9   : > { %v790_v61 = vsub.f32 %v757_v58, %v789_v56 }
 0xaeb   : > { %v821_v57 = vadd.f32 %v807_v59, %v790_v61 }
 0xaed   : > { %v823_v62 = vsel %vm822_vm13, %v821_v57, inf }
 0xaee   : > { %824 = vmin.xlane.f32.xlu2 %v823_v62 }
 0xb61   : > { %v825_v63 = vpop.xlane.xlu2 %824 }
 0xb62   : > { %vm826_vm14 = vcmp.eq.f32.partialorder %v821_v57, %v825_v63 }
 0xb63   : > { %v827_v0 = vsel %vm826_vm14, %v802_v48, 16 }
 0xb64   : > { %v828_v1 = vsel %vm822_vm13, %v827_v0, 2147483647 }
 0xb65   : > { %v830_v2 = vshra.s32 %v828_v1, 16  ;;  %v829_v4 = vand.u32 65535, %v828_v1 }
 0xb67   : > { %v832_v3 = vcvt.s32.f32 %v830_v2  ;;  %v831_v6 = vcvt.s32.f32 %v829_v4 }
 0xb69   : > { %833 = vmin.xlane.f32.xlu2 %v832_v3 }
 0xbdc   : > { %v834_v5 = vpop.xlane.xlu2 %833 }
 0xbdd   : > { %vm835_vm15 = vcmp.eq.f32.partialorder %v832_v3, %v834_v5  ;;  %v840_v17 = vcvt.f32.s32 %v834_v5 }
 0xbde   : > { %v836_v8 = vsel %vm835_vm15, %v831_v6, inf }
 0xbdf   : > { %837 = vmin.xlane.f32.xlu2 %v836_v8  ;;  %v841_v21 = vshll.u32 %v840_v17, 16 }
 0xc52   : > { %v838_v19 = vpop.xlane.xlu2 %837 }
 0xc53   : > { %v839_v53 = vcvt.f32.s32 %v838_v19 }
 0xc55   : > { %v1890_v23 = vadd.s32 %v841_v21, %v839_v53 }
 0xc57   : > { %vm843_vm2 = vcmp.eq.s32.totalorder %v802_v48, %v1890_v23 }
 0xc58   : > { %v1481_v22 = vsel %vm843_vm2, 1.0, %v1630_v30 }
 0xc59   : > { %1482 = vmatmul.msk.f32.vlgmr.msrb.gmra.mxu3 %vm822_vm13, %v1481_v22 }
 0xc5a   : > { %1148 = vmatpush.bf16.msrb.mxu3 %v1744_v35 }
 0xc5e   : > { %1149 = vmatpush.bf16.msrb.mxu3 %v1742_v34 }
 0xc62   : > { %1150 = vmatpush.bf16.msrb.mxu3 %v1750_v36 }
 0xc66   : > { %1151 = vmatpush.bf16.msrb.mxu3 %v1754_v37 }
 0xcdc   : > { %v1898_v24 = vpop.f32.mrf.mxu3 }
 0xcdd   : > { %v888_v25 = vpack.c.bf16 %v1898_v24, %v1898_v24 }
 0xcdf   : > { %1491 = vmatmul.msk.bf16.vlgmr.msra.gmra.mxu0 %vm281_vm0, %v888_v25 }
 0xce0   : > { %1163 = vmatpush.bf16.msra.mxu0 %v1693_v16 }
 0xce4   : > { %1164 = vmatpush.bf16.msra.mxu0 %v1702_v20 }
 0xd5c   : > { %v914_v31 = vpop.f32.mrf.mxu0 }
 0xd5d   : > { %v915_v28 = vadd.f32 %v1543_v27, %v914_v31 }
 0xd5f   : > { %v918_v29 = vmax.f32 %v915_v28, 0.0 }
 0xd61   : > { %v919_v38 = vpack.c.bf16 %v918_v29, %v918_v29 }
 0xd63   : > { %1500 = vmatmul.msk.bf16.vlgmr.msrb.gmra.mxu1 %vm356_vm1, %v919_v38 }
 0xd64   : > { %v916_v32 = vpop.f32.mrf.mxu0 }
 0xde0   : > { %v949_v33 = vpop.f32.mrf.mxu1 }
 0xde1   : > { %v950_v41 = vadd.f32 %v1544_v39, %v949_v33 }
 0xde3   : > { %v953_v42 = vadd.f32 %v950_v41, %v1711_v26 }
 0xde5   : > { %v954_v43 = vpack.c.bf16 %v953_v42, %v953_v42 }
 0xde7   : > { %1501 = vmatmul.msk.bf16.vlgmr.msrb.gmra.mxu2 %vm281_vm0, %v954_v43  ;;  %1503 = vmatmul.msk.bf16.vlgmr.msrb.gmra.mxu0 %vm281_vm0, %v954_v43 }
 0xde8   : > { %v951_v44 = vpop.f32.mrf.mxu1  ;;  %1290 = vmatpush.bf16.msrb.mxu0 %v1693_v16 }
 0xdec   : > { %1291 = vmatpush.bf16.msrb.mxu0 %v1702_v20 }
 0xe64   : > { %v1035_v18 = vpop.f32.mrf.mxu0 }
 0xe65   : > { %v1036_v13 = vadd.f32 %v1768_v7, %v1035_v18 }
 0xe6a   : > { %v967_v45 = vpop.f32.mrf.mxu2 }
 0xe6b   : > { %v971_v46 = vsel %vm356_vm1, %v967_v45, -inf }
 0xe6c   : > { %v972_v47 = vrot.slane %v971_v46, 4  ;;  %v1037_v48 = vpop.f32.mrf.mxu0 }
 0xe6e   : > { %v973_v49 = vmax.f32 %v971_v46, %v972_v47 }
 0xe70   : > { %v974_v50 = vrot.slane %v973_v49, 2 }
 0xe72   : > { %v975_v51 = vmax.f32 %v973_v49, %v974_v50  ;;  %v969_v26 = vpop.f32.mrf.mxu2 }
 0xe74   : > { %v976_v52 = vrot.slane %v975_v51, 1 }
 0xe76   : > { %v977_v54 = vmax.f32 %v975_v51, %v976_v52 }
 0xe78   : > { %v978_v55 = vsub.f32 %v967_v45, %v977_v54 }
 0xe7a   : > { %v979_v56 = vmul.f32 1.442695, %v978_v55 }
 0xe7c   : > { %1581 = vpow2.f32 %v979_v56 }
 0xe82   : > { %v1582_v58 = vpop.eup %1581 }
 0xe83   : > { %v981_v16 = vsel %vm356_vm1, %v1582_v58, 0.0 }
 0xe84   : > { %v982_v59 = vrot.slane %v981_v16, 4 }
 0xe86   : > { %v983_v20 = vadd.f32 %v982_v59, %v981_v16 }
 0xe88   : > { %v984_v61 = vrot.slane %v983_v20, 2 }
 0xe8a   : > { %v985_v57 = vadd.f32 %v984_v61, %v983_v20 }
 0xe8c   : > { %v986_v62 = vrot.slane %v985_v57, 1 }
 0xe8e   : > { %v987_v63 = vadd.f32 %v986_v62, %v985_v57 }
 0xe90   : > { %1583 = vrcp.f32 %v987_v63  ;;  %v999_v3 = vand.u32 2147483648, %v987_v63  ;;  %v997_v5 = vand.u32 2147483647, %v987_v63  ;;  %vm993_vm4 = vweird.f32 %v987_v63 }
 0xe92   : > { %v1000_v8 = vor.u32 1.1754944e-38, %v999_v3  ;;  %vm998_vm6 = vcmp.eq.f32.partialorder %v997_v5, 8.507059e+37 }
 0xe96   : > { %v1584_v0 = vpop.eup %1583 }
 0xe97   : > { %v989_v1 = vmul.f32 %v1584_v0, %v987_v63  ;;  %vm994_vm3 = vweird.f32 %v1584_v0 }
 0xe98   : > { %vm995_vm5 = vmor %vm993_vm4, %vm994_vm3 }
 0xe99   : > { %v990_v2 = vsub.f32 1.0, %v989_v1 }
 0xe9b   : > { %v991_v4 = vmul.f32 %v1584_v0, %v990_v2 }
 0xe9d   : > { %v992_v6 = vadd.f32 %v1584_v0, %v991_v4 }
 0xe9f   : > { %v996_v9 = vsel %vm995_vm5, %v1584_v0, %v992_v6 }
 0xea0   : > { %v1001_v10 = vsel %vm998_vm6, %v1000_v8, %v996_v9 }
 0xea1   : > { %v1002_v11 = vmul.f32 %v1582_v58, %v1001_v10 }
 0xea3   : > { %v1003_v12 = vsel %vm356_vm1, %v1002_v11, 0.0 }
 0xea4   : > { %1004 = vadd.xlane.f32.xlu2 %v1003_v12 }
 0xebc   : > { %1060 = vrot.lane.b32.xlu2 %v1036_v13, %s1628_s20 }
 0xec4   : > { %1077 = vrot.lane.b32.xlu2 %v953_v42, %s1629_s23 }
 0xf17   : > { %v1005_v15 = vpop.xlane.xlu2 %1004 }
 0xf18   : > { %v1006_v17 = vadd.f32 1e-08, %v1005_v15 }
 0xf1a   : > { %1585 = vrcp.f32 %v1006_v17 }
 0xf1f   : > { %v1061_v42 = vpop.permute.xlu2 %1060 }
 0xf20   : > { %v1586_v19 = vpop.eup %1585 }
 0xf21   : > { %v1008_v21 = vmul.f32 %v1586_v19, %v1002_v11 }
 0xf23   : > { %v1009_v53 = vpack.c.bf16 %v1008_v21, %v1008_v21 }
 0xf25   : > { %1502 = vmatmul.msk.bf16.vlgmr.msra.gmra.mxu3 %vm356_vm1, %v1009_v53 }
 0xf26   : > { %1275 = vmatpush.bf16.msra.mxu3 %v1744_v35 }
 0xf27   : > { %v1078_v48 = vpop.permute.xlu2 %1077 }
 0xf2a   : > { %1276 = vmatpush.bf16.msra.mxu3 %v1742_v34 }
 0xf2e   : > { %1277 = vmatpush.bf16.msra.mxu3 %v1750_v36 }
 0xf32   : > { %1278 = vmatpush.bf16.msra.mxu3 %v1754_v37 }
 0xfa8   : > { %v1022_v30 = vpop.f32.mrf.mxu3 }
 0xfa9   : > { %v1023_v22 = vadd.f32 %v1780_v14, %v1022_v30 }
 0xfab   : > { %v1039_v25 = vadd.f32 %v1036_v13, %v1023_v22 }
 0xfad   : > { %v1504_v27 = vmul.f32 -1.442695, %v1039_v25 }
 0xfaf   : > { %1587 = vpow2.f32 %v1504_v27 }
 0xfb0   : > { %v1024_v31 = vpop.f32.mrf.mxu3 }
 0xfb5   : > { %v1588_v28 = vpop.eup %1587 }
 0xfb6   : > { %v1043_v29 = vadd.f32 1.0, %v1588_v28 }
 0xfb8   : > { %1589 = vrcp.f32 %v1043_v29  ;;  %v1055_v35 = vand.u32 2147483648, %v1043_v29  ;;  %v1053_v34 = vand.u32 2147483647, %v1043_v29  ;;  %vm1049_vm8 = vweird.f32 %v1043_v29 }
 0xfba   : > { %v1056_v37 = vor.u32 1.1754944e-38, %v1055_v35  ;;  %vm1054_vm10 = vcmp.eq.f32.partialorder %v1053_v34, 8.507059e+37 }
 0xfbe   : > { %v1590_v38 = vpop.eup %1589 }
 0xfbf   : > { %v1045_v32 = vmul.f32 %v1590_v38, %v1043_v29  ;;  %vm1050_vm7 = vweird.f32 %v1590_v38 }
 0xfc0   : > { %vm1051_vm9 = vmor %vm1049_vm8, %vm1050_vm7 }
 0xfc1   : > { %v1046_v39 = vsub.f32 1.0, %v1045_v32 }
 0xfc3   : > { %v1047_v33 = vmul.f32 %v1590_v38, %v1046_v39 }
 0xfc5   : > { %v1048_v36 = vadd.f32 %v1590_v38, %v1047_v33 }
 0xfc7   : > { %v1052_v41 = vsel %vm1051_vm9, %v1590_v38, %v1048_v36 }
 0xfc8   : > { %v1057_v43 = vsel %vm1054_vm10, %v1056_v37, %v1052_v41 }
 0xfc9   : > { %v1063_v44 = vmul.f32 %v1061_v42, %v1057_v43  ;;  %v1070_v47 = vsub.f32 1.0, %v1057_v43  ;;  %v1080_v51 = vmul.f32 %v1078_v48, %v1057_v43 }
 0xfcb   : > { %1065 = vrot.lane.b32.xlu1 %v1063_v44, %s1628_s20 }
0x103d   : > { %v1066_v18 = vpop.permute.xlu1 %1065 }
0x103e   : > { %v1068_v45 = vadd.f32 %v1066_v18, %v1023_v22 }
0x1040   : > { %1591 = vtanh.f32 %v1068_v45 }
0x1046   : > { %v1592_v46 = vpop.eup %1591 }
0x1047   : > { %1072 = vrot.lane.b32.xlu0 %v1592_v46, %s1627_s29 }
0x10b9   : > { %v1073_v49 = vpop.permute.xlu0 %1072 }
0x10ba   : > { %v1075_v50 = vmul.f32 %v1073_v49, %v1070_v47 }
0x10bc   : > { %v1931_v26 = vadd.f32 %v1080_v51, %v1075_v50 }
0x10be   : > { %v1082_v52 = vpack.c.bf16 %v1931_v26, %v1931_v26 }
0x10c0   : > { %1084 = vrot.lane.b32.xlu0 %v1082_v52, %s1627_s29 }
0x1132   : > { %v1085_v54 = vpop.permute.xlu0 %1084 }
0x1133   : > { %1505 = vmatmul.msk.bf16.vlgmr.msra.gmra.mxu1 %vm281_vm0, %v1085_v54  ;;  %1507 = vmatmul.msk.bf16.vlgmr.msra.gmra.mxu0 %vm281_vm0, %v1085_v54 }
0x11b0   : > { %v1098_v55 = vpop.f32.mrf.mxu1  ;;  %v1166_v56 = vpop.f32.mrf.mxu0 }
0x11b1   : > { %v1102_v58 = vsel %vm356_vm1, %v1098_v55, -inf  ;;  %v1167_v16 = vadd.f32 %v1768_v7, %v1166_v56 }
0x11b2   : > { %v1103_v59 = vrot.slane %v1102_v58, 4 }
0x11b3   : > { %1191 = vrot.lane.b32.xlu2 %v1167_v16, %s1628_s20 }
0x11b4   : > { %v1104_v20 = vmax.f32 %v1102_v58, %v1103_v59 }
0x11b6   : > { %v1105_v61 = vrot.slane %v1104_v20, 2 }
0x11b8   : > { %v1106_v57 = vmax.f32 %v1104_v20, %v1105_v61  ;;  %v1100_v62 = vpop.f32.mrf.mxu1  ;;  %v1168_v63 = vpop.f32.mrf.mxu0 }
0x11ba   : > { %v1107_v0 = vrot.slane %v1106_v57, 1 }
0x11bc   : > { %v1108_v1 = vmax.f32 %v1106_v57, %v1107_v0  ;;  %v1617_v0 = vld [vmem:[%s1998_s3 + $0x1] ss:$0 sm:$0xff] }
0x11be   : > { %v1109_v2 = vsub.f32 %v1098_v55, %v1108_v1 }
0x11c0   : > { %v1110_v3 = vmul.f32 1.442695, %v1109_v2 }
0x11c2   : > { %1593 = vpow2.f32 %v1110_v3 }
0x11c8   : > { %v1594_v4 = vpop.eup %1593 }
0x11c9   : > { %v1112_v5 = vsel %vm356_vm1, %v1594_v4, 0.0 }
0x11ca   : > { %v1113_v6 = vrot.slane %v1112_v5, 4 }
0x11cc   : > { %v1114_v8 = vadd.f32 %v1113_v6, %v1112_v5 }
0x11ce   : > { %v1115_v9 = vrot.slane %v1114_v8, 2 }
0x11d0   : > { %v1116_v7 = vadd.f32 %v1115_v9, %v1114_v8 }
0x11d2   : > { %v1117_v10 = vrot.slane %v1116_v7, 1 }
0x11d4   : > { %v1118_v11 = vadd.f32 %v1117_v10, %v1116_v7 }
0x11d6   : > { %1595 = vrcp.f32 %v1118_v11  ;;  %v1130_v17 = vand.u32 2147483648, %v1118_v11  ;;  %v1128_v21 = vand.u32 2147483647, %v1118_v11  ;;  %vm1124_vm12 = vweird.f32 %v1118_v11 }
0x11d8   : > { %v1131_v30 = vor.u32 1.1754944e-38, %v1130_v17  ;;  %vm1129_vm14 = vcmp.eq.f32.partialorder %v1128_v21, 8.507059e+37 }
0x11dc   : > { %v1596_v12 = vpop.eup %1595 }
0x11dd   : > { %v1120_v13 = vmul.f32 %v1596_v12, %v1118_v11  ;;  %vm1125_vm11 = vweird.f32 %v1596_v12 }
0x11de   : > { %vm1126_vm13 = vmor %vm1124_vm12, %vm1125_vm11  ;;  %vm1347_vm12 = vcmask 269312  }
0x11df   : > { %v1121_v15 = vsub.f32 1.0, %v1120_v13 }
0x11e1   : > { %v1122_v19 = vmul.f32 %v1596_v12, %v1121_v15 }
0x11e3   : > { %v1123_v53 = vadd.f32 %v1596_v12, %v1122_v19 }
0x11e5   : > { %v1127_v22 = vsel %vm1126_vm13, %v1596_v12, %v1123_v53  ;;  %vm1349_vm13 = vcmask 277504  }
0x11e6   : > { %v1132_v25 = vsel %vm1129_vm14, %v1131_v30, %v1127_v22 }
0x11e7   : > { %v1133_v27 = vmul.f32 %v1594_v4, %v1132_v25 }
0x11e9   : > { %v1134_v31 = vsel %vm356_vm1, %v1133_v27, 0.0 }
0x11ea   : > { %1135 = vadd.xlane.f32.xlu1 %v1134_v31 }
0x125d   : > { %v1136_v28 = vpop.xlane.xlu1 %1135 }
0x125e   : > { %v1137_v29 = vadd.f32 1e-08, %v1136_v28 }
0x1260   : > { %1597 = vrcp.f32 %v1137_v29 }
0x1266   : > { %v1598_v38 = vpop.eup %1597 }
0x1267   : > { %v1139_v32 = vmul.f32 %v1598_v38, %v1133_v27 }
0x1269   : > { %v1140_v39 = vpack.c.bf16 %v1139_v32, %v1139_v32 }
0x126b   : > { %1506 = vmatmul.msk.bf16.vlgmr.msrb.gmra.mxu3 %vm356_vm1, %v1140_v39 }
0x12ee   : > { %v1153_v35 = vpop.f32.mrf.mxu3 }
0x12ef   : > { %v1154_v33 = vadd.f32 %v1780_v14, %v1153_v35  ;;  %v1192_v14 = vpop.permute.xlu2 %1191 }
0x12f1   : > { %v1170_v34 = vadd.f32 %v1167_v16, %v1154_v33 }
0x12f3   : > { %v1508_v36 = vmul.f32 -1.442695, %v1170_v34 }
0x12f5   : > { %1599 = vpow2.f32 %v1508_v36 }
0x12f6   : > { %v1155_v37 = vpop.f32.mrf.mxu3 }
0x12fb   : > { %v1600_v41 = vpop.eup %1599 }
0x12fc   : > { %v1174_v42 = vadd.f32 1.0, %v1600_v41 }
0x12fe   : > { %1601 = vrcp.f32 %v1174_v42  ;;  %v1186_v45 = vand.u32 2147483648, %v1174_v42  ;;  %v1184_v47 = vand.u32 2147483647, %v1174_v42  ;;  %vm1180_vm2 = vweird.f32 %v1174_v42 }
0x1300   : > { %v1187_v49 = vor.u32 1.1754944e-38, %v1186_v45  ;;  %vm1185_vm4 = vcmp.eq.f32.partialorder %v1184_v47, 8.507059e+37 }
0x1304   : > { %v1602_v43 = vpop.eup %1601 }
0x1305   : > { %v1176_v44 = vmul.f32 %v1602_v43, %v1174_v42  ;;  %vm1181_vm15 = vweird.f32 %v1602_v43 }
0x1306   : > { %vm1182_vm3 = vmor %vm1180_vm2, %vm1181_vm15 }
0x1307   : > { %v1177_v18 = vsub.f32 1.0, %v1176_v44 }
0x1309   : > { %v1178_v46 = vmul.f32 %v1602_v43, %v1177_v18 }
0x130b   : > { %v1179_v48 = vadd.f32 %v1602_v43, %v1178_v46 }
0x130d   : > { %v1183_v50 = vsel %vm1182_vm3, %v1602_v43, %v1179_v48 }
0x130e   : > { %v1188_v51 = vsel %vm1185_vm4, %v1187_v49, %v1183_v50  ;;  %v1618_v50 = vld [vmem:[%s1998_s3] ss:$0 sm:$0xff] }
0x130f   : > { %v1194_v52 = vmul.f32 %v1192_v14, %v1188_v51  ;;  %v1201_v58 = vsub.f32 1.0, %v1188_v51  ;;  %v1207_v59 = vmul.f32 %v1188_v51, %v1931_v26 }
0x1311   : > { %1196 = vrot.lane.b32.xlu0 %v1194_v52, %s1628_s20 }
0x1383   : > { %v1197_v54 = vpop.permute.xlu0 %1196 }
0x1384   : > { %v1199_v55 = vadd.f32 %v1197_v54, %v1154_v33 }
0x1386   : > { %1603 = vtanh.f32 %v1199_v55 }
0x138c   : > { %v1604_v56 = vpop.eup %1603 }
0x138d   : > { %1203 = vrot.lane.b32.xlu2 %v1604_v56, %s1627_s29 }
0x13e7   : > { %v1204_v16 = vpop.permute.xlu2 %1203 }
0x13e8   : > { %v1206_v20 = vmul.f32 %v1204_v16, %v1201_v58 }
0x13ea   : > { %v1948_v61 = vadd.f32 %v1207_v59, %v1206_v20 }
0x13ec   : > { %v1209_v57 = vpack.c.bf16 %v1948_v61, %v1948_v61 }
0x13ee   : > { %1211 = vrot.lane.b32.xlu0 %v1209_v57, %s1627_s29 }
0x1460   : > { %v1212_v62 = vpop.permute.xlu0 %1211 }
0x1461   : > { %1509 = vmatmul.msk.bf16.vlgmr.msra.gmra.mxu2 %vm281_vm0, %v1212_v62  ;;  %1511 = vmatmul.msk.bf16.vlgmr.msrb.gmra.mxu0 %vm281_vm0, %v1212_v62 }
0x14de   : > { %v1293_v63 = vpop.f32.mrf.mxu0 }
0x14df   : > { %v1958_v1 = vadd.f32 %v1617_v0, %v1293_v63 }
0x14e1   : > { %1318 = vrot.lane.b32.xlu0 %v1958_v1, %s1628_s20 }
0x14e4   : > { %v1225_v26 = vpop.f32.mrf.mxu2 }
0x14e5   : > { %v1229_v2 = vsel %vm356_vm1, %v1225_v26, -inf }
0x14e6   : > { %v1230_v3 = vrot.slane %v1229_v2, 4  ;;  %v1295_v4 = vpop.f32.mrf.mxu0 }
0x14e8   : > { %v1231_v5 = vmax.f32 %v1229_v2, %v1230_v3 }
0x14e9   : > { %870 = vrot.lane.b32.xlu0 %v1898_v24, %s1629_s23  ;;  %s1516_s23 = sshll.u32 %s2001_s16, 4 }
0x14ea   : > { %v1232_v6 = vrot.slane %v1231_v5, 2  ;;  %s1975_s6 = scalar_lea.vmem %s1999_s4, %s1516_s23 }
0x14ec   : > { %v1233_v8 = vmax.f32 %v1231_v5, %v1232_v6  ;;  %v1227_v9 = vpop.f32.mrf.mxu2 }
0x14ee   : > { %v1234_v7 = vrot.slane %v1233_v8, 1 }
0x14f0   : > { %v1235_v10 = vmax.f32 %v1233_v8, %v1234_v7 }
0x14f2   : > { %v1236_v11 = vsub.f32 %v1225_v26, %v1235_v10 }
0x14f4   : > { %v1237_v12 = vmul.f32 1.442695, %v1236_v11 }
0x14f6   : > { %1605 = vpow2.f32 %v1237_v12 }
0x14fc   : > { %v1606_v13 = vpop.eup %1605 }
0x14fd   : > { %v1239_v15 = vsel %vm356_vm1, %v1606_v13, 0.0 }
0x14fe   : > { %v1240_v17 = vrot.slane %v1239_v15, 4 }
0x1500   : > { %v1241_v19 = vadd.f32 %v1240_v17, %v1239_v15 }
0x1502   : > { %v1242_v21 = vrot.slane %v1241_v19, 2 }
0x1504   : > { %v1243_v53 = vadd.f32 %v1242_v21, %v1241_v19  ;;  %v1336_v21 = vcvt.s32.f32 %v1890_v23 }
0x1506   : > { %v1244_v30 = vrot.slane %v1243_v53, 1 }
0x1508   : > { %v1245_v22 = vadd.f32 %v1244_v30, %v1243_v53 }
0x150a   : > { %1607 = vrcp.f32 %v1245_v22  ;;  %v1257_v31 = vand.u32 2147483648, %v1245_v22  ;;  %v1255_v29 = vand.u32 2147483647, %v1245_v22  ;;  %vm1251_vm6 = vweird.f32 %v1245_v22 }
0x150c   : > { %v1258_v32 = vor.u32 1.1754944e-38, %v1257_v31  ;;  %vm1256_vm8 = vcmp.eq.f32.partialorder %v1255_v29, 8.507059e+37 }
0x1510   : > { %v1608_v25 = vpop.eup %1607 }
0x1511   : > { %v1247_v24 = vmul.f32 %v1608_v25, %v1245_v22  ;;  %vm1252_vm5 = vweird.f32 %v1608_v25 }
0x1512   : > { %vm1253_vm7 = vmor %vm1251_vm6, %vm1252_vm5 }
0x1513   : > { %v1248_v27 = vsub.f32 1.0, %v1247_v24 }
0x1515   : > { %v1249_v28 = vmul.f32 %v1608_v25, %v1248_v27 }
0x1517   : > { %v1250_v38 = vadd.f32 %v1608_v25, %v1249_v28 }
0x1519   : > { %v1254_v39 = vsel %vm1253_vm7, %v1608_v25, %v1250_v38 }
0x151a   : > { %v1259_v35 = vsel %vm1256_vm8, %v1258_v32, %v1254_v39 }
0x151b   : > { %v1260_v33 = vmul.f32 %v1606_v13, %v1259_v35 }
0x151d   : > { %v1261_v34 = vsel %vm356_vm1, %v1260_v33, 0.0 }
0x151e   : > { %1262 = vadd.xlane.f32.xlu2 %v1261_v34 }
0x1553   : > { %v1319_v36 = vpop.permute.xlu0 %1318 }
0x155b   : > { %v871_v37 = vpop.permute.xlu0 %870 }
0x155c   : > { %v873_v41 = vsub.f32 %v1863_v40, %v871_v37 }
0x155e   : > { %v874_v42 = vmul.f32 %v873_v41, %v873_v41 }
0x1560   : > { %876 = vrot.lane.b32.xlu1 %v874_v42, %s1627_s29 }
0x1568   : > { %1338 = vrot.lane.b32.xlu1 %v1260_v33, %s1628_s20 }
0x1591   : > { %v1263_v43 = vpop.xlane.xlu2 %1262 }
0x1592   : > { %v1264_v44 = vadd.f32 1e-08, %v1263_v43 }
0x1594   : > { %1609 = vrcp.f32 %v1264_v44 }
0x159a   : > { %v1610_v18 = vpop.eup %1609 }
0x159b   : > { %v1266_v45 = vmul.f32 %v1610_v18, %v1260_v33 }
0x159d   : > { %v1267_v46 = vpack.c.bf16 %v1266_v45, %v1266_v45 }
0x159f   : > { %1510 = vmatmul.msk.bf16.vlgmr.msra.gmra.mxu3 %vm356_vm1, %v1267_v46 }
0x15d2   : > { %v877_v47 = vpop.permute.xlu1 %876 }
0x15d3   : > { %v879_v5 = vsel %vm281_vm0, %v877_v47, 0.0 }
0x15da   : > { %v1339_v40 = vpop.permute.xlu1 %1338 }
0x15db   : > { %v1345_v48 = vsel %vm356_vm1, %v1841_v60, %v1339_v40 }
0x15dc   : > { %1351 = vst [vmem:[%s1975_s6] sm:$0xff] %v1345_v48 }
0x1622   : > { %v1280_v49 = vpop.f32.mrf.mxu3 }
0x1623   : > { %v1281_v14 = vadd.f32 %v1618_v50, %v1280_v49 }
0x1625   : > { %v1297_v51 = vadd.f32 %v1958_v1, %v1281_v14 }
0x1627   : > { %v1512_v52 = vmul.f32 -1.442695, %v1297_v51 }
0x1629   : > { %1611 = vpow2.f32 %v1512_v52 }
0x162a   : > { %v1282_v54 = vpop.f32.mrf.mxu3 }
0x162f   : > { %v1612_v55 = vpop.eup %1611 }
0x1630   : > { %v1301_v56 = vadd.f32 1.0, %v1612_v55 }
0x1632   : > { %1613 = vrcp.f32 %v1301_v56  ;;  %v1313_v20 = vand.u32 2147483648, %v1301_v56  ;;  %v1311_v57 = vand.u32 2147483647, %v1301_v56  ;;  %vm1307_vm9 = vweird.f32 %v1301_v56 }
0x1634   : > { %v1314_v63 = vor.u32 1.1754944e-38, %v1313_v20  ;;  %vm1312_vm11 = vcmp.eq.f32.partialorder %v1311_v57, 8.507059e+37 }
0x1638   : > { %v1614_v58 = vpop.eup %1613 }
0x1639   : > { %v1303_v16 = vmul.f32 %v1614_v58, %v1301_v56  ;;  %vm1308_vm1 = vweird.f32 %v1614_v58 }
0x163a   : > { %vm1309_vm10 = vmor %vm1307_vm9, %vm1308_vm1 }
0x163b   : > { %v1304_v59 = vsub.f32 1.0, %v1303_v16 }
0x163d   : > { %v1305_v60 = vmul.f32 %v1614_v58, %v1304_v59 }
0x163f   : > { %v1306_v62 = vadd.f32 %v1614_v58, %v1305_v60 }
0x1641   : > { %v1310_v0 = vsel %vm1309_vm10, %v1614_v58, %v1306_v62 }
0x1642   : > { %v1315_v1 = vsel %vm1312_vm11, %v1314_v63, %v1310_v0 }
0x1643   : > { %v1321_v26 = vmul.f32 %v1319_v36, %v1315_v1  ;;  %v1328_v6 = vsub.f32 1.0, %v1315_v1  ;;  %v1334_v9 = vmul.f32 %v1315_v1, %v1948_v61 }
0x1645   : > { %1323 = vrot.lane.b32.xlu0 %v1321_v26, %s1628_s20 }
0x16b7   : > { %v1324_v2 = vpop.permute.xlu0 %1323 }
0x16b8   : > { %v1326_v3 = vadd.f32 %v1324_v2, %v1281_v14 }
0x16ba   : > { %1615 = vtanh.f32 %v1326_v3 }
0x16c0   : > { %v1616_v4 = vpop.eup %1615 }
0x16c1   : > { %1330 = vrot.lane.b32.xlu0 %v1616_v4, %s1627_s29 }
0x16eb   : > { %880 = vadd.xlane.f32.xlu0 %v879_v5 }
0x1733   : > { %v1331_v8 = vpop.permute.xlu0 %1330 }
0x1734   : > { %v1333_v7 = vmul.f32 %v1331_v8, %v1328_v6 }
0x1736   : > { %v1335_v10 = vadd.f32 %v1334_v9, %v1333_v7 }
0x1738   : > { %1342 = vrot.lane.b32.xlu2 %v1335_v10, %s1627_s29 }
0x175e   : > { %v881_v11 = vpop.xlane.xlu0 %880 }
0x175f   : > { %v882_v12 = vrot.slane %v881_v11, 4 }
0x1761   : > { %v883_v13 = vadd.f32 %v882_v12, %v881_v11 }
0x1763   : > { %v884_v15 = vrot.slane %v883_v13, 2 }
0x1765   : > { %v885_v17 = vadd.f32 %v884_v15, %v883_v13 }
0x1767   : > { %v886_v19 = vrot.slane %v885_v17, 1 }
0x1769   : > { %v887_v53 = vadd.f32 %v886_v19, %v885_v17 }
0x1792   : > { %v1343_v30 = vpop.permute.xlu2 %1342 }
0x1793   : > { %v1346_v22 = vsel %vm281_vm0, %v1343_v30, %v1336_v21 }
0x1794   : > { %v1348_v61 = vsel %vm1347_vm12, %v1346_v22, %v887_v53 }
0x1795   : > { %v1350_v25 = vsel %vm1349_vm13, %v1348_v61, 0.0 }
0x1796   : > { %1352 = vst [vmem:[%s1975_s6 + $0x8] sm:$0xff] %v1350_v25 }
0x1797 PF: > { %s14_s15 = sadd.s32 1, %s1625_s15  }
0x1798   : > { %p11_p4 = scmp.ge.s32.totalorder %s14_s15, 4  }
0x179a   :  { %13 = sbr.rel (!%p11_p4) target bundleno = 1 (0x1), region = 69 }

</bundles_post_ra>
